<compile_context>
chip_gen: v5e
topology: v5e:2x2
jax: 0.10.0
libtpu: 0.0.40
codegen_flags: <defaults>
</compile_context>

<pallas_src>
import functools

import jax
import jax.numpy as jnp
from jax import lax
from jax.experimental import pallas as pl
from jax.experimental.pallas import tpu as pltpu


EMB_C = 32  # embedding channel count, fixed by the PyTorch module


def _round_up(x, m):
    return (x + m - 1) // m * m


# ------------------------------ fused kernel --------------------------------

def _tcf_fused_kernel(p1_ref, w1_ref, b1_ref, w2_ref, b2_ref, w3_ref, b3_ref,
                      o_ref, h1_scr, t_scr, h2f_scr, *,
                      alpha, norm_output, bt, Q, Wo1, Ho2, Wo2):
    """Fused forward for a block of `bt` images.

    conv1  : relu(P @ W1 + b1)            one (bt*Q, 9C) x (9C, 32) matmul
    conv2  : in-kernel im2col -> ONE (bt*Q, 288) x (288, 32) matmul + relu
    linear : flatten valid (h, w, c) rows -> ONE (bt, 800) x (800, Fp) matmul
    norm   : y * rsqrt(sum(y^2) + 1e-10) * alpha   (matches self.normalize)
    """
    cc = EMB_C
    R = bt * Q                       # rows of h1 in this block (Q % 8 == 0)
    smax = 2 * Wo1 + 2               # largest conv2 tap shift

    # ---- conv1: whole batch block folded into the MXU M dimension ---------
    h1 = jnp.dot(p1_ref[0], w1_ref[...], preferred_element_type=jnp.float32)
    h1 = jnp.maximum(h1 + b1_ref[...], 0.0)                    # (R, 32) f32
    h1_scr[0:R, :] = h1
    h1_scr[R:R + smax, :] = jnp.zeros((smax, cc), jnp.float32)

    # ---- conv2: build the (R, 288) im2col tap matrix, single K=288 matmul --
    # Output row r = b*Q + i*Wo1 + j reads h1 row r + (dy*Wo1 + dx); for the
    # valid Ho2 x Wo2 window this never leaves image b (q + smax < Q).
    for dy in range(3):
        for dx in range(3):
            t = dy * 3 + dx
            s = dy * Wo1 + dx
            t_scr[:, t * cc:(t + 1) * cc] = (
                h1_scr[s:s + R, :].astype(jnp.bfloat16))
    h2 = jnp.dot(t_scr[...], w2_ref[...], preferred_element_type=jnp.float32)
    h2 = jnp.maximum(h2 + b2_ref[...], 0.0)                    # (R, 32) f32
    # Rows with (r % Q) outside the valid window are wrap-around garbage and
    # are never copied into h2f_scr below.
    h2 = h2.reshape(bt, Q, cc)                                 # 8-aligned split

    # ---- flatten valid (h, w, c) positions, then ONE Linear matmul ---------
    for i in range(Ho2):
        for j in range(Wo2):
            pos = i * Wo2 + j
            h2f_scr[:, pos * cc:(pos + 1) * cc] = (
                h2[:, i * Wo1 + j, :].astype(jnp.bfloat16))
    y = jnp.dot(h2f_scr[...], w3_ref[...], preferred_element_type=jnp.float32)
    y = y + b3_ref[...]                                        # (bt, Fp) f32

    # ---- normalize(x) * alpha  (padded lanes of y are exactly zero) --------
    if norm_output:
        normp = jnp.sum(y * y, axis=1, keepdims=True) + 1e-10
        y = y * lax.rsqrt(normp) * alpha                       # rsqrt -> EUP

    o_ref[...] = y[None, :, :]                                 # (1, bt, Fp)


# ------------------------------ glue (plain JAX) ----------------------------

def conv1_patches(x, k, stride):
    """x: (B, H, W, C) -> patches (B, Ho*Wo, k*k*C) in (kh, kw, cin) order."""
    B, H, W, C = x.shape
    Ho = (H - k) // stride + 1
    Wo = (W - k) // stride + 1
    cols = []
    for dy in range(k):
        for dx in range(k):
            cols.append(
                x[:, dy:dy + stride * Ho:stride, dx:dx + stride * Wo:stride, :])
    patches = jnp.concatenate(cols, axis=-1)                   # (B, Ho, Wo, kkC)
    return patches.reshape(B, Ho * Wo, k * k * C), Ho, Wo


def tcf_forward(obs, params, *, alpha=10.0, norm_output=True, initial_stride=2,
                max_batch_block=64):
    """Reproduces TCFModel.forward(obs, mode='encode')."""
    x = obs.astype(jnp.float32)                                # obs.type(torch.float)
    B = x.shape[0]
    C = x.shape[-1]

    p1, Ho1, Wo1 = conv1_patches(x, 3, initial_stride)         # (B, Ho1*Wo1, 9C)
    Ho2, Wo2 = Ho1 - 2, Wo1 - 2
    n_sp = Ho1 * Wo1
    Q = _round_up(n_sp, 8)                                     # padded rows/image
    K1 = 9 * C
    K3 = EMB_C * Ho2 * Wo2                                     # conv_embedding_size
    F = params["b3"].shape[0]
    Fp = _round_up(F, 128)                                     # lane-dense output

    # Batch blocking: bt images / grid step, >= 2 steps when possible (v7x TCs).
    bt = max(1, min(max_batch_block, (B + 1) // 2))
    G = pl.cdiv(B, bt)
    Bpad = G * bt

    p1 = p1.astype(jnp.bfloat16)                               # uint8 exact in bf16
    p1 = jnp.pad(p1, ((0, Bpad - B), (0, Q - n_sp), (0, 0)))
    p1 = p1.reshape(G, bt * Q, K1)

    w1 = params["w1"].astype(jnp.bfloat16)
    w2 = params["w2"].astype(jnp.bfloat16)
    w3 = jnp.pad(params["w3"], ((0, 0), (0, Fp - F))).astype(jnp.bfloat16)
    b1 = params["b1"].reshape(1, EMB_C).astype(jnp.float32)
    b2 = params["b2"].reshape(1, EMB_C).astype(jnp.float32)
    b3 = jnp.pad(params["b3"].reshape(1, F),
                 ((0, 0), (0, Fp - F))).astype(jnp.float32)

    kernel = functools.partial(
        _tcf_fused_kernel, alpha=alpha, norm_output=norm_output,
        bt=bt, Q=Q, Wo1=Wo1, Ho2=Ho2, Wo2=Wo2)

    flops = Bpad * (2 * Q * K1 * EMB_C + 2 * Q * (9 * EMB_C) * EMB_C
                    + 2 * K3 * Fp + 3 * Fp)
    bytes_accessed = (p1.size * 2 + w1.size * 2 + w2.size * 2 + w3.size * 2
                      + (b1.size + b2.size + b3.size) * 4 + Bpad * Fp * 4)

    out = pl.pallas_call(
        kernel,
        out_shape=jax.ShapeDtypeStruct((G, bt, Fp), jnp.float32),
        grid=(G,),
        in_specs=[
            pl.BlockSpec((1, bt * Q, K1), lambda g: (g, 0, 0)),      # patches
            pl.BlockSpec((K1, EMB_C), lambda g: (0, 0)),             # w1 (resident)
            pl.BlockSpec((1, EMB_C), lambda g: (0, 0)),              # b1
            pl.BlockSpec((9 * EMB_C, EMB_C), lambda g: (0, 0)),      # w2 (resident)
            pl.BlockSpec((1, EMB_C), lambda g: (0, 0)),              # b2
            pl.BlockSpec((K3, Fp), lambda g: (0, 0)),                # w3 (resident)
            pl.BlockSpec((1, Fp), lambda g: (0, 0)),                 # b3
        ],
        out_specs=pl.BlockSpec((1, bt, Fp), lambda g: (g, 0, 0)),
        scratch_shapes=[
            pltpu.VMEM((bt * Q + 2 * Wo1 + 2, EMB_C), jnp.float32),  # padded h1
            pltpu.VMEM((bt * Q, 9 * EMB_C), jnp.bfloat16),           # conv2 im2col
            pltpu.VMEM((bt, K3), jnp.bfloat16),                      # flattened h2
        ],
        compiler_params=pltpu.CompilerParams(
            dimension_semantics=("parallel",),
            vmem_limit_bytes=32 * 1024 * 1024),
        cost_estimate=pl.CostEstimate(
            flops=int(flops), transcendentals=int(Bpad),
            bytes_accessed=int(bytes_accessed)),
    )(p1, w1, b1, w2, b2, w3, b3)

    return out.reshape(Bpad, Fp)[:B, :F]


def tcf_reference(obs, params, *, alpha=10.0, norm_output=True, initial_stride=2):
    """Pure-JAX f32 reference (same math, no Pallas)."""
    x = obs.astype(jnp.float32)
    B = x.shape[0]
    p1, Ho1, Wo1 = conv1_patches(x, 3, initial_stride)
    h1 = jax.nn.relu(p1 @ params["w1"] + params["b1"])
    h1 = h1.reshape(B, Ho1, Wo1, EMB_C)
    p2, _, _ = conv1_patches(h1, 3, 1)
    h2 = jax.nn.relu(p2 @ params["w2"] + params["b2"])
    y = h2.reshape(B, -1) @ params["w3"] + params["b3"]
    if norm_output:
        normp = jnp.sum(y * y, axis=1, keepdims=True) + 1e-10
        y = y / jnp.sqrt(normp) * alpha
    return y


def init_params(key, image_shape, feature_size=64, initial_stride=2):
    h, w, c = image_shape
    embedding_s = (h - 3) // initial_stride + 1 - 3 + 1
    conv_embedding_size = EMB_C * embedding_s * embedding_s
    k1, k2, k3, k4, k5, k6 = jax.random.split(key, 6)

    def _uniform(k, shape, fan_in):
        bound = 1.0 / jnp.sqrt(jnp.float32(fan_in))
        return jax.random.uniform(k, shape, jnp.float32, -bound, bound)

    params = {
        # Conv1 weight: HWIO (3,3,c,32) flattened to (9c, 32)
        "w1": _uniform(k1, (3, 3, c, EMB_C), 9 * c).reshape(9 * c, EMB_C),
        "b1": _uniform(k2, (EMB_C,), 9 * c),
        # Conv2 weight: HWIO (3,3,32,32) flattened to (288, 32)
        "w2": _uniform(k3, (3, 3, EMB_C, EMB_C), 9 * EMB_C).reshape(9 * EMB_C, EMB_C),
        "b2": _uniform(k4, (EMB_C,), 9 * EMB_C),
        # Linear weight: (conv_embedding_size, feature_size), (h, w, c) flatten order
        "w3": _uniform(k5, (conv_embedding_size, feature_size), conv_embedding_size),
        "b3": _uniform(k6, (feature_size,), conv_embedding_size),
    }
    return params


# ----------------------------------- main -----------------------------------

if __name__ == "__main__":
    key = jax.random.PRNGKey(0)
    k_obs, k_params = jax.random.split(key)

    B, H, W, C = 2, 16, 16, 4
    feature_size = 64
    image_shape = (H, W, C)

    # Synthetic uint8 "image" observations, NHWC (forward casts to float).
    obs = jax.random.randint(k_obs, (B, H, W, C), 0, 256).astype(jnp.uint8)

    params = init_params(k_params, image_shape, feature_size=feature_size,
                         initial_stride=2)

    fwd = jax.jit(functools.partial(tcf_forward, alpha=10.0, norm_output=True,
                                    initial_stride=2))
    out = jax.block_until_ready(fwd(obs, params))

    assert out.shape == (B, feature_size), out.shape
    assert out.dtype == jnp.float32
    # Normalized output scaled by alpha: each row's L2 norm should be ~alpha.
    norms = jnp.sqrt(jnp.sum(out * out, axis=1))
    assert jnp.allclose(norms, 10.0, atol=1e-2), norms
    # Cross-check against the pure-JAX f32 reference (bf16 matmuls bound err).
    ref = tcf_reference(obs, params, alpha=10.0, norm_output=True,
                        initial_stride=2)
    max_err = float(jnp.max(jnp.abs(out - ref)))
    assert max_err < 0.5, max_err

    print("KERNEL_OK")
</pallas_src>

<mosaic_0001>
module attributes {stable_mosaic.version = 11 : i64} {
  func.func @_tcf_fused_kernel(%arg0: i32, %arg1: memref<1x56x36xbf16, #tpu.memory_space<vmem>>, %arg2: memref<36x32xbf16, #tpu.memory_space<vmem>>, %arg3: memref<1x32xf32, #tpu.memory_space<vmem>>, %arg4: memref<288x32xbf16, #tpu.memory_space<vmem>>, %arg5: memref<1x32xf32, #tpu.memory_space<vmem>>, %arg6: memref<800x128xbf16, #tpu.memory_space<vmem>>, %arg7: memref<1x128xf32, #tpu.memory_space<vmem>>, %arg8: memref<1x1x128xf32, #tpu.memory_space<vmem>>, %arg9: memref<72x32xf32, #tpu.memory_space<vmem>>, %arg10: memref<56x288xbf16, #tpu.memory_space<vmem>>, %arg11: memref<1x800xbf16, #tpu.memory_space<vmem>>) attributes {dimension_semantics = [#tpu.dimension_semantics<parallel>], iteration_bounds = array<i64: 2>, scalar_prefetch = 0 : i64, scratch_operands = 3 : i64, tpu.core_type = #tpu.core_type<tc>, window_params = [{transform_indices = @transform_0, window_bounds = array<i64: 1, 56, 36>}, {pipeline_mode = #tpu.pipeline_mode<synchronous>, transform_indices = @transform_1, window_bounds = array<i64: 36, 32>}, {pipeline_mode = #tpu.pipeline_mode<synchronous>, transform_indices = @transform_2, window_bounds = array<i64: 1, 32>}, {pipeline_mode = #tpu.pipeline_mode<synchronous>, transform_indices = @transform_3, window_bounds = array<i64: 288, 32>}, {pipeline_mode = #tpu.pipeline_mode<synchronous>, transform_indices = @transform_4, window_bounds = array<i64: 1, 32>}, {pipeline_mode = #tpu.pipeline_mode<synchronous>, transform_indices = @transform_5, window_bounds = array<i64: 800, 128>}, {pipeline_mode = #tpu.pipeline_mode<synchronous>, transform_indices = @transform_6, window_bounds = array<i64: 1, 128>}, {transform_indices = @transform_7, window_bounds = array<i64: 1, 1, 128>}]} {
    %c0 = arith.constant 0 : index
    %c0_0 = arith.constant 0 : index
    %c0_1 = arith.constant 0 : index
    %0 = vector.load %arg1[%c0, %c0_0, %c0_1] : memref<1x56x36xbf16, #tpu.memory_space<vmem>>, vector<1x56x36xbf16>
    %1 = vector.shape_cast %0 : vector<1x56x36xbf16> to vector<56x36xbf16>
    %c0_2 = arith.constant 0 : index
    %c0_3 = arith.constant 0 : index
    %2 = vector.load %arg2[%c0_2, %c0_3] : memref<36x32xbf16, #tpu.memory_space<vmem>>, vector<36x32xbf16>
    %cst = arith.constant dense<0.000000e+00> : vector<56x32xf32>
    %3 = tpu.matmul %1, %2, %cst {dimension_numbers = #tpu.dot_dimension_numbers<[1], [0], [0], [1], [0, 0, 1, 1], [], []>} : vector<56x36xbf16>, vector<36x32xbf16>, vector<56x32xf32> -> vector<56x32xf32>
    %c0_4 = arith.constant 0 : index
    %c0_5 = arith.constant 0 : index
    %4 = vector.load %arg3[%c0_4, %c0_5] : memref<1x32xf32, #tpu.memory_space<vmem>>, vector<1x32xf32>
    %5 = vector.broadcast %4 : vector<1x32xf32> to vector<56x32xf32>
    %6 = arith.addf %3, %5 : vector<56x32xf32>
    %cst_6 = arith.constant 0.000000e+00 : f32
    %7 = vector.broadcast %cst_6 : f32 to vector<56x32xf32>
    %8 = arith.maximumf %6, %7 : vector<56x32xf32>
    %c0_7 = arith.constant 0 : index
    %c0_8 = arith.constant 0 : index
    %9 = vector.load %arg9[%c0_7, %c0_8] : memref<72x32xf32, #tpu.memory_space<vmem>>, vector<56x32xf32>
    tpu.vector_store %arg9[%c0_7, %c0_8], %8 {strides = array<i32>} : memref<72x32xf32, #tpu.memory_space<vmem>>, vector<56x32xf32>,
    %cst_9 = arith.constant 0.000000e+00 : f32
    %10 = vector.broadcast %cst_9 : f32 to vector<16x32xf32>
    %c56 = arith.constant 56 : index
    %c0_10 = arith.constant 0 : index
    %11 = vector.load %arg9[%c56, %c0_10] : memref<72x32xf32, #tpu.memory_space<vmem>>, vector<16x32xf32>
    tpu.vector_store %arg9[%c56, %c0_10], %10 {strides = array<i32>} : memref<72x32xf32, #tpu.memory_space<vmem>>, vector<16x32xf32>,
    %c0_11 = arith.constant 0 : index
    %c0_12 = arith.constant 0 : index
    %12 = vector.load %arg9[%c0_11, %c0_12] : memref<72x32xf32, #tpu.memory_space<vmem>>, vector<56x32xf32>
    %13 = arith.truncf %12 : vector<56x32xf32> to vector<56x32xbf16>
    %c0_13 = arith.constant 0 : index
    %c0_14 = arith.constant 0 : index
    %14 = vector.load %arg10[%c0_13, %c0_14] : memref<56x288xbf16, #tpu.memory_space<vmem>>, vector<56x32xbf16>
    tpu.vector_store %arg10[%c0_13, %c0_14], %13 {strides = array<i32>} : memref<56x288xbf16, #tpu.memory_space<vmem>>, vector<56x32xbf16>,
    %c1 = arith.constant 1 : index
    %c0_15 = arith.constant 0 : index
    %15 = vector.load %arg9[%c1, %c0_15] : memref<72x32xf32, #tpu.memory_space<vmem>>, vector<56x32xf32>
    %16 = arith.truncf %15 : vector<56x32xf32> to vector<56x32xbf16>
    %c0_16 = arith.constant 0 : index
    %c32 = arith.constant 32 : index
    %17 = vector.load %arg10[%c0_16, %c32] : memref<56x288xbf16, #tpu.memory_space<vmem>>, vector<56x32xbf16>
    tpu.vector_store %arg10[%c0_16, %c32], %16 {strides = array<i32>} : memref<56x288xbf16, #tpu.memory_space<vmem>>, vector<56x32xbf16>,
    %c2 = arith.constant 2 : index
    %c0_17 = arith.constant 0 : index
    %18 = vector.load %arg9[%c2, %c0_17] : memref<72x32xf32, #tpu.memory_space<vmem>>, vector<56x32xf32>
    %19 = arith.truncf %18 : vector<56x32xf32> to vector<56x32xbf16>
    %c0_18 = arith.constant 0 : index
    %c64 = arith.constant 64 : index
    %20 = vector.load %arg10[%c0_18, %c64] : memref<56x288xbf16, #tpu.memory_space<vmem>>, vector<56x32xbf16>
    tpu.vector_store %arg10[%c0_18, %c64], %19 {strides = array<i32>} : memref<56x288xbf16, #tpu.memory_space<vmem>>, vector<56x32xbf16>,
    %c7 = arith.constant 7 : index
    %c0_19 = arith.constant 0 : index
    %21 = vector.load %arg9[%c7, %c0_19] : memref<72x32xf32, #tpu.memory_space<vmem>>, vector<56x32xf32>
    %22 = arith.truncf %21 : vector<56x32xf32> to vector<56x32xbf16>
    %c0_20 = arith.constant 0 : index
    %c96 = arith.constant 96 : index
    %23 = vector.load %arg10[%c0_20, %c96] : memref<56x288xbf16, #tpu.memory_space<vmem>>, vector<56x32xbf16>
    tpu.vector_store %arg10[%c0_20, %c96], %22 {strides = array<i32>} : memref<56x288xbf16, #tpu.memory_space<vmem>>, vector<56x32xbf16>,
    %c8 = arith.constant 8 : index
    %c0_21 = arith.constant 0 : index
    %24 = vector.load %arg9[%c8, %c0_21] : memref<72x32xf32, #tpu.memory_space<vmem>>, vector<56x32xf32>
    %25 = arith.truncf %24 : vector<56x32xf32> to vector<56x32xbf16>
    %c0_22 = arith.constant 0 : index
    %c128 = arith.constant 128 : index
    %26 = vector.load %arg10[%c0_22, %c128] : memref<56x288xbf16, #tpu.memory_space<vmem>>, vector<56x32xbf16>
    tpu.vector_store %arg10[%c0_22, %c128], %25 {strides = array<i32>} : memref<56x288xbf16, #tpu.memory_space<vmem>>, vector<56x32xbf16>,
    %c9 = arith.constant 9 : index
    %c0_23 = arith.constant 0 : index
    %27 = vector.load %arg9[%c9, %c0_23] : memref<72x32xf32, #tpu.memory_space<vmem>>, vector<56x32xf32>
    %28 = arith.truncf %27 : vector<56x32xf32> to vector<56x32xbf16>
    %c0_24 = arith.constant 0 : index
    %c160 = arith.constant 160 : index
    %29 = vector.load %arg10[%c0_24, %c160] : memref<56x288xbf16, #tpu.memory_space<vmem>>, vector<56x32xbf16>
    tpu.vector_store %arg10[%c0_24, %c160], %28 {strides = array<i32>} : memref<56x288xbf16, #tpu.memory_space<vmem>>, vector<56x32xbf16>,
    %c14 = arith.constant 14 : index
    %c0_25 = arith.constant 0 : index
    %30 = vector.load %arg9[%c14, %c0_25] : memref<72x32xf32, #tpu.memory_space<vmem>>, vector<56x32xf32>
    %31 = arith.truncf %30 : vector<56x32xf32> to vector<56x32xbf16>
    %c0_26 = arith.constant 0 : index
    %c192 = arith.constant 192 : index
    %32 = vector.load %arg10[%c0_26, %c192] : memref<56x288xbf16, #tpu.memory_space<vmem>>, vector<56x32xbf16>
    tpu.vector_store %arg10[%c0_26, %c192], %31 {strides = array<i32>} : memref<56x288xbf16, #tpu.memory_space<vmem>>, vector<56x32xbf16>,
    %c15 = arith.constant 15 : index
    %c0_27 = arith.constant 0 : index
    %33 = vector.load %arg9[%c15, %c0_27] : memref<72x32xf32, #tpu.memory_space<vmem>>, vector<56x32xf32>
    %34 = arith.truncf %33 : vector<56x32xf32> to vector<56x32xbf16>
    %c0_28 = arith.constant 0 : index
    %c224 = arith.constant 224 : index
    %35 = vector.load %arg10[%c0_28, %c224] : memref<56x288xbf16, #tpu.memory_space<vmem>>, vector<56x32xbf16>
    tpu.vector_store %arg10[%c0_28, %c224], %34 {strides = array<i32>} : memref<56x288xbf16, #tpu.memory_space<vmem>>, vector<56x32xbf16>,
    %c16 = arith.constant 16 : index
    %c0_29 = arith.constant 0 : index
    %36 = vector.load %arg9[%c16, %c0_29] : memref<72x32xf32, #tpu.memory_space<vmem>>, vector<56x32xf32>
    %37 = arith.truncf %36 : vector<56x32xf32> to vector<56x32xbf16>
    %c0_30 = arith.constant 0 : index
    %c256 = arith.constant 256 : index
    %38 = vector.load %arg10[%c0_30, %c256] : memref<56x288xbf16, #tpu.memory_space<vmem>>, vector<56x32xbf16>
    tpu.vector_store %arg10[%c0_30, %c256], %37 {strides = array<i32>} : memref<56x288xbf16, #tpu.memory_space<vmem>>, vector<56x32xbf16>,
    %c0_31 = arith.constant 0 : index
    %c0_32 = arith.constant 0 : index
    %39 = vector.load %arg10[%c0_31, %c0_32] : memref<56x288xbf16, #tpu.memory_space<vmem>>, vector<56x288xbf16>
    %c0_33 = arith.constant 0 : index
    %c0_34 = arith.constant 0 : index
    %40 = vector.load %arg4[%c0_33, %c0_34] : memref<288x32xbf16, #tpu.memory_space<vmem>>, vector<288x32xbf16>
    %cst_35 = arith.constant dense<0.000000e+00> : vector<56x32xf32>
    %41 = tpu.matmul %39, %40, %cst_35 {dimension_numbers = #tpu.dot_dimension_numbers<[1], [0], [0], [1], [0, 0, 1, 1], [], []>} : vector<56x288xbf16>, vector<288x32xbf16>, vector<56x32xf32> -> vector<56x32xf32>
    %c0_36 = arith.constant 0 : index
    %c0_37 = arith.constant 0 : index
    %42 = vector.load %arg5[%c0_36, %c0_37] : memref<1x32xf32, #tpu.memory_space<vmem>>, vector<1x32xf32>
    %43 = vector.broadcast %42 : vector<1x32xf32> to vector<56x32xf32>
    %44 = arith.addf %41, %43 : vector<56x32xf32>
    %cst_38 = arith.constant 0.000000e+00 : f32
    %45 = vector.broadcast %cst_38 : f32 to vector<56x32xf32>
    %46 = arith.maximumf %44, %45 : vector<56x32xf32>
    %47 = vector.shape_cast %46 : vector<56x32xf32> to vector<1x56x32xf32>
    %48 = vector.extract_strided_slice %47 {offsets = [0, 0, 0], sizes = [1, 1, 32], strides = [1, 1, 1]} : vector<1x56x32xf32> to vector<1x1x32xf32>
    %49 = vector.shape_cast %48 : vector<1x1x32xf32> to vector<1x32xf32>
    %50 = arith.truncf %49 : vector<1x32xf32> to vector<1x32xbf16>
    %c0_39 = arith.constant 0 : index
    %c0_40 = arith.constant 0 : index
    %51 = vector.load %arg11[%c0_39, %c0_40] : memref<1x800xbf16, #tpu.memory_space<vmem>>, vector<1x32xbf16>
    tpu.vector_store %arg11[%c0_39, %c0_40], %50 {strides = array<i32>} : memref<1x800xbf16, #tpu.memory_space<vmem>>, vector<1x32xbf16>,
    %52 = vector.extract_strided_slice %47 {offsets = [0, 1, 0], sizes = [1, 1, 32], strides = [1, 1, 1]} : vector<1x56x32xf32> to vector<1x1x32xf32>
    %53 = vector.shape_cast %52 : vector<1x1x32xf32> to vector<1x32xf32>
    %54 = arith.truncf %53 : vector<1x32xf32> to vector<1x32xbf16>
    %c0_41 = arith.constant 0 : index
    %c32_42 = arith.constant 32 : index
    %55 = vector.load %arg11[%c0_41, %c32_42] : memref<1x800xbf16, #tpu.memory_space<vmem>>, vector<1x32xbf16>
    tpu.vector_store %arg11[%c0_41, %c32_42], %54 {strides = array<i32>} : memref<1x800xbf16, #tpu.memory_space<vmem>>, vector<1x32xbf16>,
    %56 = vector.extract_strided_slice %47 {offsets = [0, 2, 0], sizes = [1, 1, 32], strides = [1, 1, 1]} : vector<1x56x32xf32> to vector<1x1x32xf32>
    %57 = vector.shape_cast %56 : vector<1x1x32xf32> to vector<1x32xf32>
    %58 = arith.truncf %57 : vector<1x32xf32> to vector<1x32xbf16>
    %c0_43 = arith.constant 0 : index
    %c64_44 = arith.constant 64 : index
    %59 = vector.load %arg11[%c0_43, %c64_44] : memref<1x800xbf16, #tpu.memory_space<vmem>>, vector<1x32xbf16>
    tpu.vector_store %arg11[%c0_43, %c64_44], %58 {strides = array<i32>} : memref<1x800xbf16, #tpu.memory_space<vmem>>, vector<1x32xbf16>,
    %60 = vector.extract_strided_slice %47 {offsets = [0, 3, 0], sizes = [1, 1, 32], strides = [1, 1, 1]} : vector<1x56x32xf32> to vector<1x1x32xf32>
    %61 = vector.shape_cast %60 : vector<1x1x32xf32> to vector<1x32xf32>
    %62 = arith.truncf %61 : vector<1x32xf32> to vector<1x32xbf16>
    %c0_45 = arith.constant 0 : index
    %c96_46 = arith.constant 96 : index
    %63 = vector.load %arg11[%c0_45, %c96_46] : memref<1x800xbf16, #tpu.memory_space<vmem>>, vector<1x32xbf16>
    tpu.vector_store %arg11[%c0_45, %c96_46], %62 {strides = array<i32>} : memref<1x800xbf16, #tpu.memory_space<vmem>>, vector<1x32xbf16>,
    %64 = vector.extract_strided_slice %47 {offsets = [0, 4, 0], sizes = [1, 1, 32], strides = [1, 1, 1]} : vector<1x56x32xf32> to vector<1x1x32xf32>
    %65 = vector.shape_cast %64 : vector<1x1x32xf32> to vector<1x32xf32>
    %66 = arith.truncf %65 : vector<1x32xf32> to vector<1x32xbf16>
    %c0_47 = arith.constant 0 : index
    %c128_48 = arith.constant 128 : index
    %67 = vector.load %arg11[%c0_47, %c128_48] : memref<1x800xbf16, #tpu.memory_space<vmem>>, vector<1x32xbf16>
    tpu.vector_store %arg11[%c0_47, %c128_48], %66 {strides = array<i32>} : memref<1x800xbf16, #tpu.memory_space<vmem>>, vector<1x32xbf16>,
    %68 = vector.extract_strided_slice %47 {offsets = [0, 7, 0], sizes = [1, 1, 32], strides = [1, 1, 1]} : vector<1x56x32xf32> to vector<1x1x32xf32>
    %69 = vector.shape_cast %68 : vector<1x1x32xf32> to vector<1x32xf32>
    %70 = arith.truncf %69 : vector<1x32xf32> to vector<1x32xbf16>
    %c0_49 = arith.constant 0 : index
    %c160_50 = arith.constant 160 : index
    %71 = vector.load %arg11[%c0_49, %c160_50] : memref<1x800xbf16, #tpu.memory_space<vmem>>, vector<1x32xbf16>
    tpu.vector_store %arg11[%c0_49, %c160_50], %70 {strides = array<i32>} : memref<1x800xbf16, #tpu.memory_space<vmem>>, vector<1x32xbf16>,
    %72 = vector.extract_strided_slice %47 {offsets = [0, 8, 0], sizes = [1, 1, 32], strides = [1, 1, 1]} : vector<1x56x32xf32> to vector<1x1x32xf32>
    %73 = vector.shape_cast %72 : vector<1x1x32xf32> to vector<1x32xf32>
    %74 = arith.truncf %73 : vector<1x32xf32> to vector<1x32xbf16>
    %c0_51 = arith.constant 0 : index
    %c192_52 = arith.constant 192 : index
    %75 = vector.load %arg11[%c0_51, %c192_52] : memref<1x800xbf16, #tpu.memory_space<vmem>>, vector<1x32xbf16>
    tpu.vector_store %arg11[%c0_51, %c192_52], %74 {strides = array<i32>} : memref<1x800xbf16, #tpu.memory_space<vmem>>, vector<1x32xbf16>,
    %76 = vector.extract_strided_slice %47 {offsets = [0, 9, 0], sizes = [1, 1, 32], strides = [1, 1, 1]} : vector<1x56x32xf32> to vector<1x1x32xf32>
    %77 = vector.shape_cast %76 : vector<1x1x32xf32> to vector<1x32xf32>
    %78 = arith.truncf %77 : vector<1x32xf32> to vector<1x32xbf16>
    %c0_53 = arith.constant 0 : index
    %c224_54 = arith.constant 224 : index
    %79 = vector.load %arg11[%c0_53, %c224_54] : memref<1x800xbf16, #tpu.memory_space<vmem>>, vector<1x32xbf16>
    tpu.vector_store %arg11[%c0_53, %c224_54], %78 {strides = array<i32>} : memref<1x800xbf16, #tpu.memory_space<vmem>>, vector<1x32xbf16>,
    %80 = vector.extract_strided_slice %47 {offsets = [0, 10, 0], sizes = [1, 1, 32], strides = [1, 1, 1]} : vector<1x56x32xf32> to vector<1x1x32xf32>
    %81 = vector.shape_cast %80 : vector<1x1x32xf32> to vector<1x32xf32>
    %82 = arith.truncf %81 : vector<1x32xf32> to vector<1x32xbf16>
    %c0_55 = arith.constant 0 : index
    %c256_56 = arith.constant 256 : index
    %83 = vector.load %arg11[%c0_55, %c256_56] : memref<1x800xbf16, #tpu.memory_space<vmem>>, vector<1x32xbf16>
    tpu.vector_store %arg11[%c0_55, %c256_56], %82 {strides = array<i32>} : memref<1x800xbf16, #tpu.memory_space<vmem>>, vector<1x32xbf16>,
    %84 = vector.extract_strided_slice %47 {offsets = [0, 11, 0], sizes = [1, 1, 32], strides = [1, 1, 1]} : vector<1x56x32xf32> to vector<1x1x32xf32>
    %85 = vector.shape_cast %84 : vector<1x1x32xf32> to vector<1x32xf32>
    %86 = arith.truncf %85 : vector<1x32xf32> to vector<1x32xbf16>
    %c0_57 = arith.constant 0 : index
    %c288 = arith.constant 288 : index
    %87 = vector.load %arg11[%c0_57, %c288] : memref<1x800xbf16, #tpu.memory_space<vmem>>, vector<1x32xbf16>
    tpu.vector_store %arg11[%c0_57, %c288], %86 {strides = array<i32>} : memref<1x800xbf16, #tpu.memory_space<vmem>>, vector<1x32xbf16>,
    %88 = vector.extract_strided_slice %47 {offsets = [0, 14, 0], sizes = [1, 1, 32], strides = [1, 1, 1]} : vector<1x56x32xf32> to vector<1x1x32xf32>
    %89 = vector.shape_cast %88 : vector<1x1x32xf32> to vector<1x32xf32>
    %90 = arith.truncf %89 : vector<1x32xf32> to vector<1x32xbf16>
    %c0_58 = arith.constant 0 : index
    %c320 = arith.constant 320 : index
    %91 = vector.load %arg11[%c0_58, %c320] : memref<1x800xbf16, #tpu.memory_space<vmem>>, vector<1x32xbf16>
    tpu.vector_store %arg11[%c0_58, %c320], %90 {strides = array<i32>} : memref<1x800xbf16, #tpu.memory_space<vmem>>, vector<1x32xbf16>,
    %92 = vector.extract_strided_slice %47 {offsets = [0, 15, 0], sizes = [1, 1, 32], strides = [1, 1, 1]} : vector<1x56x32xf32> to vector<1x1x32xf32>
    %93 = vector.shape_cast %92 : vector<1x1x32xf32> to vector<1x32xf32>
    %94 = arith.truncf %93 : vector<1x32xf32> to vector<1x32xbf16>
    %c0_59 = arith.constant 0 : index
    %c352 = arith.constant 352 : index
    %95 = vector.load %arg11[%c0_59, %c352] : memref<1x800xbf16, #tpu.memory_space<vmem>>, vector<1x32xbf16>
    tpu.vector_store %arg11[%c0_59, %c352], %94 {strides = array<i32>} : memref<1x800xbf16, #tpu.memory_space<vmem>>, vector<1x32xbf16>,
    %96 = vector.extract_strided_slice %47 {offsets = [0, 16, 0], sizes = [1, 1, 32], strides = [1, 1, 1]} : vector<1x56x32xf32> to vector<1x1x32xf32>
    %97 = vector.shape_cast %96 : vector<1x1x32xf32> to vector<1x32xf32>
    %98 = arith.truncf %97 : vector<1x32xf32> to vector<1x32xbf16>
    %c0_60 = arith.constant 0 : index
    %c384 = arith.constant 384 : index
    %99 = vector.load %arg11[%c0_60, %c384] : memref<1x800xbf16, #tpu.memory_space<vmem>>, vector<1x32xbf16>
    tpu.vector_store %arg11[%c0_60, %c384], %98 {strides = array<i32>} : memref<1x800xbf16, #tpu.memory_space<vmem>>, vector<1x32xbf16>,
    %100 = vector.extract_strided_slice %47 {offsets = [0, 17, 0], sizes = [1, 1, 32], strides = [1, 1, 1]} : vector<1x56x32xf32> to vector<1x1x32xf32>
    %101 = vector.shape_cast %100 : vector<1x1x32xf32> to vector<1x32xf32>
    %102 = arith.truncf %101 : vector<1x32xf32> to vector<1x32xbf16>
    %c0_61 = arith.constant 0 : index
    %c416 = arith.constant 416 : index
    %103 = vector.load %arg11[%c0_61, %c416] : memref<1x800xbf16, #tpu.memory_space<vmem>>, vector<1x32xbf16>
    tpu.vector_store %arg11[%c0_61, %c416], %102 {strides = array<i32>} : memref<1x800xbf16, #tpu.memory_space<vmem>>, vector<1x32xbf16>,
    %104 = vector.extract_strided_slice %47 {offsets = [0, 18, 0], sizes = [1, 1, 32], strides = [1, 1, 1]} : vector<1x56x32xf32> to vector<1x1x32xf32>
    %105 = vector.shape_cast %104 : vector<1x1x32xf32> to vector<1x32xf32>
    %106 = arith.truncf %105 : vector<1x32xf32> to vector<1x32xbf16>
    %c0_62 = arith.constant 0 : index
    %c448 = arith.constant 448 : index
    %107 = vector.load %arg11[%c0_62, %c448] : memref<1x800xbf16, #tpu.memory_space<vmem>>, vector<1x32xbf16>
    tpu.vector_store %arg11[%c0_62, %c448], %106 {strides = array<i32>} : memref<1x800xbf16, #tpu.memory_space<vmem>>, vector<1x32xbf16>,
    %108 = vector.extract_strided_slice %47 {offsets = [0, 21, 0], sizes = [1, 1, 32], strides = [1, 1, 1]} : vector<1x56x32xf32> to vector<1x1x32xf32>
    %109 = vector.shape_cast %108 : vector<1x1x32xf32> to vector<1x32xf32>
    %110 = arith.truncf %109 : vector<1x32xf32> to vector<1x32xbf16>
    %c0_63 = arith.constant 0 : index
    %c480 = arith.constant 480 : index
    %111 = vector.load %arg11[%c0_63, %c480] : memref<1x800xbf16, #tpu.memory_space<vmem>>, vector<1x32xbf16>
    tpu.vector_store %arg11[%c0_63, %c480], %110 {strides = array<i32>} : memref<1x800xbf16, #tpu.memory_space<vmem>>, vector<1x32xbf16>,
    %112 = vector.extract_strided_slice %47 {offsets = [0, 22, 0], sizes = [1, 1, 32], strides = [1, 1, 1]} : vector<1x56x32xf32> to vector<1x1x32xf32>
    %113 = vector.shape_cast %112 : vector<1x1x32xf32> to vector<1x32xf32>
    %114 = arith.truncf %113 : vector<1x32xf32> to vector<1x32xbf16>
    %c0_64 = arith.constant 0 : index
    %c512 = arith.constant 512 : index
    %115 = vector.load %arg11[%c0_64, %c512] : memref<1x800xbf16, #tpu.memory_space<vmem>>, vector<1x32xbf16>
    tpu.vector_store %arg11[%c0_64, %c512], %114 {strides = array<i32>} : memref<1x800xbf16, #tpu.memory_space<vmem>>, vector<1x32xbf16>,
    %116 = vector.extract_strided_slice %47 {offsets = [0, 23, 0], sizes = [1, 1, 32], strides = [1, 1, 1]} : vector<1x56x32xf32> to vector<1x1x32xf32>
    %117 = vector.shape_cast %116 : vector<1x1x32xf32> to vector<1x32xf32>
    %118 = arith.truncf %117 : vector<1x32xf32> to vector<1x32xbf16>
    %c0_65 = arith.constant 0 : index
    %c544 = arith.constant 544 : index
    %119 = vector.load %arg11[%c0_65, %c544] : memref<1x800xbf16, #tpu.memory_space<vmem>>, vector<1x32xbf16>
    tpu.vector_store %arg11[%c0_65, %c544], %118 {strides = array<i32>} : memref<1x800xbf16, #tpu.memory_space<vmem>>, vector<1x32xbf16>,
    %120 = vector.extract_strided_slice %47 {offsets = [0, 24, 0], sizes = [1, 1, 32], strides = [1, 1, 1]} : vector<1x56x32xf32> to vector<1x1x32xf32>
    %121 = vector.shape_cast %120 : vector<1x1x32xf32> to vector<1x32xf32>
    %122 = arith.truncf %121 : vector<1x32xf32> to vector<1x32xbf16>
    %c0_66 = arith.constant 0 : index
    %c576 = arith.constant 576 : index
    %123 = vector.load %arg11[%c0_66, %c576] : memref<1x800xbf16, #tpu.memory_space<vmem>>, vector<1x32xbf16>
    tpu.vector_store %arg11[%c0_66, %c576], %122 {strides = array<i32>} : memref<1x800xbf16, #tpu.memory_space<vmem>>, vector<1x32xbf16>,
    %124 = vector.extract_strided_slice %47 {offsets = [0, 25, 0], sizes = [1, 1, 32], strides = [1, 1, 1]} : vector<1x56x32xf32> to vector<1x1x32xf32>
    %125 = vector.shape_cast %124 : vector<1x1x32xf32> to vector<1x32xf32>
    %126 = arith.truncf %125 : vector<1x32xf32> to vector<1x32xbf16>
    %c0_67 = arith.constant 0 : index
    %c608 = arith.constant 608 : index
    %127 = vector.load %arg11[%c0_67, %c608] : memref<1x800xbf16, #tpu.memory_space<vmem>>, vector<1x32xbf16>
    tpu.vector_store %arg11[%c0_67, %c608], %126 {strides = array<i32>} : memref<1x800xbf16, #tpu.memory_space<vmem>>, vector<1x32xbf16>,
    %128 = vector.extract_strided_slice %47 {offsets = [0, 28, 0], sizes = [1, 1, 32], strides = [1, 1, 1]} : vector<1x56x32xf32> to vector<1x1x32xf32>
    %129 = vector.shape_cast %128 : vector<1x1x32xf32> to vector<1x32xf32>
    %130 = arith.truncf %129 : vector<1x32xf32> to vector<1x32xbf16>
    %c0_68 = arith.constant 0 : index
    %c640 = arith.constant 640 : index
    %131 = vector.load %arg11[%c0_68, %c640] : memref<1x800xbf16, #tpu.memory_space<vmem>>, vector<1x32xbf16>
    tpu.vector_store %arg11[%c0_68, %c640], %130 {strides = array<i32>} : memref<1x800xbf16, #tpu.memory_space<vmem>>, vector<1x32xbf16>,
    %132 = vector.extract_strided_slice %47 {offsets = [0, 29, 0], sizes = [1, 1, 32], strides = [1, 1, 1]} : vector<1x56x32xf32> to vector<1x1x32xf32>
    %133 = vector.shape_cast %132 : vector<1x1x32xf32> to vector<1x32xf32>
    %134 = arith.truncf %133 : vector<1x32xf32> to vector<1x32xbf16>
    %c0_69 = arith.constant 0 : index
    %c672 = arith.constant 672 : index
    %135 = vector.load %arg11[%c0_69, %c672] : memref<1x800xbf16, #tpu.memory_space<vmem>>, vector<1x32xbf16>
    tpu.vector_store %arg11[%c0_69, %c672], %134 {strides = array<i32>} : memref<1x800xbf16, #tpu.memory_space<vmem>>, vector<1x32xbf16>,
    %136 = vector.extract_strided_slice %47 {offsets = [0, 30, 0], sizes = [1, 1, 32], strides = [1, 1, 1]} : vector<1x56x32xf32> to vector<1x1x32xf32>
    %137 = vector.shape_cast %136 : vector<1x1x32xf32> to vector<1x32xf32>
    %138 = arith.truncf %137 : vector<1x32xf32> to vector<1x32xbf16>
    %c0_70 = arith.constant 0 : index
    %c704 = arith.constant 704 : index
    %139 = vector.load %arg11[%c0_70, %c704] : memref<1x800xbf16, #tpu.memory_space<vmem>>, vector<1x32xbf16>
    tpu.vector_store %arg11[%c0_70, %c704], %138 {strides = array<i32>} : memref<1x800xbf16, #tpu.memory_space<vmem>>, vector<1x32xbf16>,
    %140 = vector.extract_strided_slice %47 {offsets = [0, 31, 0], sizes = [1, 1, 32], strides = [1, 1, 1]} : vector<1x56x32xf32> to vector<1x1x32xf32>
    %141 = vector.shape_cast %140 : vector<1x1x32xf32> to vector<1x32xf32>
    %142 = arith.truncf %141 : vector<1x32xf32> to vector<1x32xbf16>
    %c0_71 = arith.constant 0 : index
    %c736 = arith.constant 736 : index
    %143 = vector.load %arg11[%c0_71, %c736] : memref<1x800xbf16, #tpu.memory_space<vmem>>, vector<1x32xbf16>
    tpu.vector_store %arg11[%c0_71, %c736], %142 {strides = array<i32>} : memref<1x800xbf16, #tpu.memory_space<vmem>>, vector<1x32xbf16>,
    %144 = vector.extract_strided_slice %47 {offsets = [0, 32, 0], sizes = [1, 1, 32], strides = [1, 1, 1]} : vector<1x56x32xf32> to vector<1x1x32xf32>
    %145 = vector.shape_cast %144 : vector<1x1x32xf32> to vector<1x32xf32>
    %146 = arith.truncf %145 : vector<1x32xf32> to vector<1x32xbf16>
    %c0_72 = arith.constant 0 : index
    %c768 = arith.constant 768 : index
    %147 = vector.load %arg11[%c0_72, %c768] : memref<1x800xbf16, #tpu.memory_space<vmem>>, vector<1x32xbf16>
    tpu.vector_store %arg11[%c0_72, %c768], %146 {strides = array<i32>} : memref<1x800xbf16, #tpu.memory_space<vmem>>, vector<1x32xbf16>,
    %c0_73 = arith.constant 0 : index
    %c0_74 = arith.constant 0 : index
    %148 = vector.load %arg11[%c0_73, %c0_74] : memref<1x800xbf16, #tpu.memory_space<vmem>>, vector<1x800xbf16>
    %c0_75 = arith.constant 0 : index
    %c0_76 = arith.constant 0 : index
    %149 = vector.load %arg6[%c0_75, %c0_76] : memref<800x128xbf16, #tpu.memory_space<vmem>>, vector<800x128xbf16>
    %cst_77 = arith.constant dense<0.000000e+00> : vector<1x128xf32>
    %150 = tpu.matmul %148, %149, %cst_77 {dimension_numbers = #tpu.dot_dimension_numbers<[1], [0], [0], [1], [0, 0, 1, 1], [], []>} : vector<1x800xbf16>, vector<800x128xbf16>, vector<1x128xf32> -> vector<1x128xf32>
    %c0_78 = arith.constant 0 : index
    %c0_79 = arith.constant 0 : index
    %151 = vector.load %arg7[%c0_78, %c0_79] : memref<1x128xf32, #tpu.memory_space<vmem>>, vector<1x128xf32>
    %152 = arith.addf %150, %151 : vector<1x128xf32>
    %153 = arith.mulf %152, %152 : vector<1x128xf32>
    %cst_80 = arith.constant dense<0.000000e+00> : vector<1xf32>
    %154 = vector.multi_reduction <add>, %153, %cst_80 [1] : vector<1x128xf32> to vector<1xf32>
    %155 = vector.shape_cast %154 : vector<1xf32> to vector<1x1xf32>
    %cst_81 = arith.constant 1.000000e-10 : f32
    %156 = vector.broadcast %cst_81 : f32 to vector<1x1xf32>
    %157 = arith.addf %155, %156 : vector<1x1xf32>
    %158 = math.rsqrt %157 : vector<1x1xf32>
    %159 = vector.broadcast %158 : vector<1x1xf32> to vector<1x128xf32>
    %160 = arith.mulf %152, %159 : vector<1x128xf32>
    %cst_82 = arith.constant 1.000000e+01 : f32
    %161 = vector.broadcast %cst_82 : f32 to vector<1x128xf32>
    %162 = arith.mulf %160, %161 : vector<1x128xf32>
    %163 = vector.shape_cast %162 : vector<1x128xf32> to vector<1x1x128xf32>
    %c0_83 = arith.constant 0 : index
    %c0_84 = arith.constant 0 : index
    %c0_85 = arith.constant 0 : index
    %164 = vector.load %arg8[%c0_83, %c0_84, %c0_85] : memref<1x1x128xf32, #tpu.memory_space<vmem>>, vector<1x1x128xf32>
    tpu.vector_store %arg8[%c0_83, %c0_84, %c0_85], %163 {strides = array<i32>} : memref<1x1x128xf32, #tpu.memory_space<vmem>>, vector<1x1x128xf32>,
    return
  }
  func.func @transform_0(%arg0: i32) -> (i32, i32, i32) {
    %c0_i32 = arith.constant 0 : i32
    %c0_i32_0 = arith.constant 0 : i32
    %c0_i32_1 = arith.constant 0 : i32
    return %arg0, %c0_i32, %c0_i32_0 : i32, i32, i32
  }
  func.func @transform_1(%arg0: i32) -> (i32, i32) {
    %c0_i32 = arith.constant 0 : i32
    %c0_i32_0 = arith.constant 0 : i32
    %c0_i32_1 = arith.constant 0 : i32
    return %c0_i32, %c0_i32_0 : i32, i32
  }
  func.func @transform_2(%arg0: i32) -> (i32, i32) {
    %c0_i32 = arith.constant 0 : i32
    %c0_i32_0 = arith.constant 0 : i32
    %c0_i32_1 = arith.constant 0 : i32
    return %c0_i32, %c0_i32_0 : i32, i32
  }
  func.func @transform_3(%arg0: i32) -> (i32, i32) {
    %c0_i32 = arith.constant 0 : i32
    %c0_i32_0 = arith.constant 0 : i32
    %c0_i32_1 = arith.constant 0 : i32
    return %c0_i32, %c0_i32_0 : i32, i32
  }
  func.func @transform_4(%arg0: i32) -> (i32, i32) {
    %c0_i32 = arith.constant 0 : i32
    %c0_i32_0 = arith.constant 0 : i32
    %c0_i32_1 = arith.constant 0 : i32
    return %c0_i32, %c0_i32_0 : i32, i32
  }
  func.func @transform_5(%arg0: i32) -> (i32, i32) {
    %c0_i32 = arith.constant 0 : i32
    %c0_i32_0 = arith.constant 0 : i32
    %c0_i32_1 = arith.constant 0 : i32
    return %c0_i32, %c0_i32_0 : i32, i32
  }
  func.func @transform_6(%arg0: i32) -> (i32, i32) {
    %c0_i32 = arith.constant 0 : i32
    %c0_i32_0 = arith.constant 0 : i32
    %c0_i32_1 = arith.constant 0 : i32
    return %c0_i32, %c0_i32_0 : i32, i32
  }
  func.func @transform_7(%arg0: i32) -> (i32, i32, i32) {
    %c0_i32 = arith.constant 0 : i32
    %c0_i32_0 = arith.constant 0 : i32
    %c0_i32_1 = arith.constant 0 : i32
    return %arg0, %c0_i32, %c0_i32_0 : i32, i32, i32
  }
}

</mosaic_0001>

<bundles_post_ra>
// kernel: tcf_forward.1
= control target key start
LH: loop header
LB: loop body
LE: loop exit
PB: predicated region body
PF: predicated region fallthrough
CT: control target
= control target key end

     0   :  { %12 = vsyncpa [#allocation6], 0  ;;  %s3101_s0 = inlined_call_operand.vmem [shape: bf16[2,56,36], index: 0, kind: input, shape index: {}]   ;;  %s3102_s1 = inlined_call_operand.vmem [shape: bf16[36,32], index: 1, kind: input, shape index: {}]   ;;  %s3103_s2 = inlined_call_operand.vmem [shape: f32[1,32], index: 2, kind: input, shape index: {}]   ;;  %s3104_s3 = inlined_call_operand.vmem [shape: bf16[288,32], index: 3, kind: input, shape index: {}]   ;;  %s3105_s4 = inlined_call_operand.vmem [shape: f32[1,32], index: 4, kind: input, shape index: {}]   ;;  %s3106_s5 = inlined_call_operand.vmem [shape: bf16[800,128], index: 5, kind: input, shape index: {}]   ;;  %s3107_s6 = inlined_call_operand.vmem [shape: f32[1,128], index: 6, kind: input, shape index: {}]   ;;  %s3108_s7 = inlined_call_operand.hbm [shape: f32[2,1,128], index: 7, kind: output, shape index: {}]  }
   0x1   :  { %14 = vsyncpa [#allocation6 + $0x1], 0  ;;  %s2521_s24 = smov 0   ;;  %s2523_s25 = smov 0  }
   0x2   :  { %s2525_s26 = smov 0   ;;  %s2527_s27 = smov 0  }
   0x3 LB: > { %s2542_s28 = sadd.s32 4294967295, %s2475_s27   ;;  %s1927_s29 = sadd.s32 4294967294, %s2475_s27   ;;  %s2475_s27 = sphi %s2527_s27, %s3122_s27   ;;  %s2471_s26 = sphi %s2525_s26, %s3121_s26   ;;  %s2467_s25 = sphi %s2523_s25, %s3120_s25   ;;  %s2463_s24 = sphi %s2521_s24, %s3119_s24  }
   0x4   : > { %s2546_s30 = sadd.s32 1, %s2475_s27   ;;  %s179_s8 = sadd.s32 1, %s2471_s26 }
   0x5   : > { %s176_s9 = ssub.s32 %s2475_s27, %s2546_s30  ;;  %p189_p0 = scmp.ne.s32.totalorder %s2471_s26, %s2467_s25 }
   0x6   : > { %p177_p1 = scmp.eq.s32.totalorder %s176_s9, 0  ;;  %p190_p2 = scmp.eq.s32.totalorder %s2542_s28, 1 }
   0x7   : > { %p195_p3 = scmp.ne.s32.totalorder %s2467_s25, %s2463_s24  ;;  %p196_p4 = scmp.eq.s32.totalorder %s1927_s29, 1 }
   0x8   : > { %s2557_s10 = scalar_select %p177_p1, %s2471_s26, %s179_s8  }
   0x9   : > { %p2559_p5 = por %p190_p2, %p189_p0  ;;  %p2563_p6 = por %p196_p4, %p195_p3 }
   0xa   : > { %p1930_p7 = scmp.ge.s32.totalorder %s2475_s27, 1  ;;  %p240_p8 = scmp.lt.s32.totalorder %s2475_s27, 3 }
   0xc   : > { %p241_p9 = pnand %p1930_p7, %p240_p8 }
   0xd   : > { %p271_p10 = scmp.lt.s32.totalorder (!%p241_p9), %s2542_s28, 1  ;;  %s2477_s16 = smov (!%p241_p9), 64  }
   0xe   : > { %244 = sbr.rel (%p241_p9) target bundleno = 1032 (0x408), region = 48  ;;  %s2478_s17 = smov (!%p241_p9), 32  }
   0xf   : > { %s269_s21 = sand.u32 (!%p241_p9), 1, %s2467_s25   ;;  %s1868_s29 = scalar_lea.hbm (!%p241_p9), %s3108_s7, %s2542_s28 }
  0x10   : > { %s270_s8 = scalar_lea.vmem (!%p241_p9), [#allocation5], %s269_s21  ;;  %s1872_s13 = sshll.u32 (!%p241_p9), %s1868_s29, 4  ;;  %s1873_s13 = int_to_ptr.hbm [resolvable:$true] %s1872_s13 }
  0x11   : > { %s1870_s9 = sshll.u32 (!%p241_p9), %s270_s8, 4  ;;  %s1860_s14 = scalar_lea.sflag (!%p241_p9), [#allocation6], %s269_s21  ;;  %s1871_s9 = int_to_ptr.vmem [resolvable:$true] %s1870_s9 }
  0x13   : > { %v288_v0 = vld [vmem:[%s3102_s1 + $0x10] sm:$0x3]  ;;  %vm339_vm0 = vcmask 1041408   ;;  %s272_s15 = scalar_select %p271_p10, %s2542_s28, 1  ;;  %v2287_v4 = vld [vmem:[%s3102_s1 + $0x8] sm:$0xff]  ;;  %v2286_v5 = vld [vmem:[%s3102_s1] sm:$0xff] }
  0x14   : > { %v320_v1 = vunpack.c.l.b16 %v288_v0  ;;  %vm326_vm1 = vcmask 293888   ;;  %v2586_v12 = vld [vmem:[%s3103_s2] ss:$0 sm:$0xff]  ;;  %vm378_vm2 = vcmask 261120   ;;  %v2314_v18 = vld [vmem:[%s3104_s3 + $0x88] sm:$0xff]  ;;  %vm402_vm3 = vcmask 257024  }
  0x15   : > { %s2365_s18 = smul.u32 28, %s272_s15  ;;  %1036 = vmatpush.bf16.msra.mxu3 %v2314_v18  ;;  %v2313_v21 = vld [vmem:[%s3104_s3 + $0x80] sm:$0xff]  ;;  %vm452_vm4 = vcmask 519424   ;;  %vm502_vm5 = vcmask 781824   ;;  %vm552_vm6 = vcmask 1044224   ;;  %vm1062_vm7 = vcmask 253952  }
  0x16   : > { %v323_v2 = vpack.c.b16 %v320_v1, %v320_v1  ;;  %vm1063_vm8 = vsmask.f32 256  ;;  %vm1070_vm10 = vcmask 1040384   ;;  %vm1081_vm11 = vcmask 516352   ;;  %s2427_s15 = sshra.s32 %s1873_s13, 4  ;;  %s2428_s15 = int_to_ptr.hbm [resolvable:$true] %s2427_s15 }
  0x17   : > { %s275_s23 = scalar_lea.vmem %s3101_s0, %s2365_s18  ;;  %s2479_s18 = smov 96   ;;  %vm2775_vm9 = vmand %vm1062_vm7, %vm1063_vm8  ;;  %vm1093_vm13 = vcmask 778752   ;;  %vm1108_vm15 = vcmask 1041152  }
  0x18   : > { %v341_v3 = vsel %vm339_vm0, %v323_v2, 0  ;;  %v2283_v6 = vld [vmem:[%s275_s23] sm:$0xff]  ;;  %v2284_v7 = vld [vmem:[%s275_s23 + $0x8] sm:$0xff]  ;;  %v2285_v8 = vld [vmem:[%s275_s23 + $0x10] sm:$0xff]  ;;  %s2429_s19 = scalar_lea.hbm %s2428_s15, 1  ;;  %p2434_p0 = scmp.lt.s32.totalorder %s2428_s15, %s3108_s7 }
  0x19   : > { %348 = vmatpush.bf16.msra.mxu0 %v341_v3  ;;  %v283_v9 = vld [vmem:[%s275_s23 + $0x18] sm:$0xf]  ;;  %1037 = vmatpush.bf16.msra.mxu3 %v2313_v21  ;;  %vm2851_vm12 = vmand %vm1081_vm11, %vm1063_vm8  ;;  %p2430_p11 = scmp.ne.s32.totalorder %s2428_s15, %s2429_s19 }
  0x1a   : > { %v306_v10 = vunpack.c.l.b16 %v283_v9  ;;  %v2480_v9 = vmov 0.0   ;;  %vm2862_vm14 = vmand %vm1093_vm13, %vm1063_vm8 }
  0x1b   : > { %386 = vst.msk [vmem:[#allocation2 + $0x38] sm:$0xff] %vm378_vm2, %v2480_v9  ;;  %vm2926_vm0 = vmand %vm1108_vm15, %vm1063_vm8  ;;  %p2431_p12 = pnand %p2430_p11, %p2559_p5 }
  0x1c   : > { %v310_v11 = vpack.c.b16 %v306_v10, %v306_v10  ;;  %387 = vst.msk [vmem:[#allocation2 + $0x40] sm:$0xff] %vm378_vm2, %v2480_v9 }
  0x1d   : > { %349 = vmatpush.bf16.msra.mxu0 %v2287_v4  ;;  %p2432_p13 = pneg %p2431_p12 }
  0x21   : > { %350 = vmatpush.bf16.msra.mxu0 %v2286_v5 }
  0x24   : > { %1952 = vmatmul.msk.bf16.vlgmr.msra.gmra.mxu0 %vm326_vm1, %v2283_v6 }
  0x34   : > { %1953 = vmatmul.msk.bf16.gmra.mxu0 %vm326_vm1, %v2284_v7 }
  0x44   : > { %1954 = vmatmul.msk.bf16.gmra.mxu0 %vm326_vm1, %v2285_v8 }
  0x54   : > { %1955 = vmatmul.msk.bf16.gmra.mxu0 %vm326_vm1, %v310_v11 }
  0xa1   : > { %v352_v13 = vpop.f32.mrf.mxu0 }
  0xa2   : > { %v353_v14 = vadd.f32 %v2586_v12, %v352_v13 }
  0xa4   : > { %v371_v15 = vmax.f32 %v353_v14, 0.0 }
  0xa6   : > { %379 = vst.msk [vmem:[#allocation2] sm:$0xff] %vm378_vm2, %v371_v15 }
  0xa9   : > { %v354_v16 = vpop.f32.mrf.mxu0 }
  0xaa   : > { %v355_v17 = vadd.f32 %v2586_v12, %v354_v16 }
  0xac   : > { %v372_v19 = vmax.f32 %v355_v17, 0.0 }
  0xad   : > { %v388_v20 = vld [vmem:[#allocation2] sm:$0xff] }
  0xae   : > { %380 = vst.msk [vmem:[#allocation2 + $0x8] sm:$0xff] %vm378_vm2, %v372_v19  ;;  %v395_v22 = vpack.c.bf16 %v388_v20, %v388_v20 }
  0xb0   : > { %403 = vst.msk [vmem:[#allocation3] sm:$0xf] %vm402_vm3, %v395_v22 }
  0xb1   : > { %v357_v23 = vpop.f32.mrf.mxu0 }
  0xb2   : > { %v358_v24 = vadd.f32 %v2586_v12, %v357_v23 }
  0xb4   : > { %v373_v25 = vmax.f32 %v358_v24, 0.0 }
  0xb5   : > { %v460_v26 = vld [vmem:[#allocation2 + $0x2] sm:$0xff] }
  0xb6   : > { %v410_v27 = vld [vmem:[#allocation2 + $0x1] sm:$0xff]  ;;  %381 = vst.msk [vmem:[#allocation2 + $0x10] sm:$0xff] %vm378_vm2, %v373_v25  ;;  %v467_v28 = vpack.c.bf16 %v460_v26, %v460_v26 }
  0xb7   : > { %v417_v29 = vpack.c.bf16 %v410_v27, %v410_v27  ;;  %v560_v30 = vld [vmem:[#allocation2 + $0x8] sm:$0xff] }
  0xb8   : > { %v567_v31 = vpack.c.bf16 %v560_v30, %v560_v30  ;;  %481 = vrot.lane.b32.xlu2 %v467_v28, %s2477_s16  ;;  %v510_v2 = vld [vmem:[#allocation2 + $0x7] sm:$0xff] }
  0xb9   : > { %431 = vrot.lane.b32.xlu0 %v417_v29, %s2478_s17  ;;  %v359_v32 = vpop.f32.mrf.mxu0  ;;  %v517_v6 = vpack.c.bf16 %v510_v2, %v510_v2 }
  0xba   : > { %574 = vst.msk [vmem:[#allocation3 + $0x4] sm:$0xf] %vm402_vm3, %v567_v31  ;;  %v360_v33 = vadd.f32 %v2586_v12, %v359_v32 }
  0xbb   : > { %404 = vst.msk [vmem:[#allocation3 + $0xc] sm:$0xf] %vm402_vm3, %v567_v31 }
  0xbc   : > { %v374_v34 = vmax.f32 %v360_v33, 0.0 }
  0xbd   : > { %v728_v35 = vld [vmem:[#allocation2 + $0x10] sm:$0xff] }
  0xbe   : > { %v630_v36 = vld [vmem:[#allocation2 + $0xe] sm:$0xff]  ;;  %v735_v38 = vpack.c.bf16 %v728_v35, %v728_v35  ;;  %382 = vst.msk [vmem:[#allocation2 + $0x18] sm:$0xff] %vm378_vm2, %v374_v34 }
  0xbf   : > { %v679_v37 = vld [vmem:[#allocation2 + $0xf] sm:$0xff]  ;;  %v637_v39 = vpack.c.bf16 %v630_v36, %v630_v36 }
  0xc0   : > { %v686_v40 = vpack.c.bf16 %v679_v37, %v679_v37  ;;  %v581_v41 = vld [vmem:[#allocation2 + $0x9] sm:$0xff]  ;;  %742 = vst.msk [vmem:[#allocation3 + $0x8] sm:$0xf] %vm402_vm3, %v735_v38 }
  0xc1   : > { %v588_v42 = vpack.c.bf16 %v581_v41, %v581_v41  ;;  %651 = vrot.lane.b32.xlu1 %v637_v39, %s2477_s16  ;;  %v362_v43 = vpop.f32.mrf.mxu0  ;;  %575 = vst.msk [vmem:[#allocation3 + $0x10] sm:$0xf] %vm402_vm3, %v735_v38  ;;  %v461_v55 = vld [vmem:[#allocation2 + $0xa] sm:$0xff] }
  0xc2   : > { %700 = vrot.lane.b32.xlu2 %v686_v40, %s2479_s18  ;;  %v363_v44 = vadd.f32 %v2586_v12, %v362_v43  ;;  %405 = vst.msk [vmem:[#allocation3 + $0x18] sm:$0xf] %vm402_vm3, %v735_v38  ;;  %v468_v60 = vpack.c.bf16 %v461_v55, %v461_v55  ;;  %v2301_v55 = vld [vmem:[%s3104_s3 + $0x20] sm:$0xff] }
  0xc3   : > { %602 = vrot.lane.b32.xlu0 %v588_v42, %s2478_s17 }
  0xc4   : > { %v375_v45 = vmax.f32 %v363_v44, 0.0  ;;  %v2312_v44 = vld [vmem:[%s3104_s3 + $0x78] sm:$0xff] }
  0xc5   : > { %v729_v46 = vld [vmem:[#allocation2 + $0x18] sm:$0xff]  ;;  %1004 = vmatpush.bf16.msra.mxu2 %v2312_v44 }
  0xc6   : > { %v680_v47 = vld [vmem:[#allocation2 + $0x17] sm:$0xff]  ;;  %v736_v49 = vpack.c.bf16 %v729_v46, %v729_v46  ;;  %383 = vst.msk [vmem:[#allocation2 + $0x20] sm:$0xff] %vm378_vm2, %v375_v45 }
  0xc7   : > { %v582_v48 = vld [vmem:[#allocation2 + $0x11] sm:$0xff]  ;;  %v2615_v50 = vpack.c.bf16 %v680_v47, %v680_v47  ;;  %v2311_v47 = vld [vmem:[%s3104_s3 + $0x70] sm:$0xff] }
  0xc8   : > { %v589_v51 = vpack.c.bf16 %v582_v48, %v582_v48  ;;  %743 = vst.msk [vmem:[#allocation3 + $0x14] sm:$0xf] %vm402_vm3, %v736_v49  ;;  %v631_v54 = vld [vmem:[#allocation2 + $0x16] sm:$0xff]  ;;  %v1966_v61 = vld [vmem:[#allocation3 + $0x8] sm:$0xf] }
  0xc9   : > { %433 = vrot.lane.b32.xlu1 %v588_v42, %s2478_s17  ;;  %v364_v52 = vpop.f32.mrf.mxu0  ;;  %576 = vst.msk [vmem:[#allocation3 + $0x1c] sm:$0xf] %vm402_vm3, %v736_v49  ;;  %v638_v59 = vpack.c.bf16 %v631_v54, %v631_v54  ;;  %v462_v3 = vld [vmem:[#allocation2 + $0x12] sm:$0xff]  ;;  %1005 = vmatpush.bf16.msra.mxu2 %v2311_v47 }
  0xca   : > { %702 = vrot.lane.b32.xlu2 %v2615_v50, %s2479_s18  ;;  %v365_v53 = vadd.f32 %v2586_v12, %v364_v52  ;;  %406 = vst.msk [vmem:[#allocation3 + $0x24] sm:$0xf] %vm402_vm3, %v736_v49  ;;  %v469_v7 = vpack.c.bf16 %v462_v3, %v462_v3  ;;  %v2304_v48 = vld [vmem:[%s3104_s3 + $0x38] sm:$0xff]  ;;  %v2309_v52 = vld [vmem:[%s3104_s3 + $0x60] sm:$0xff] }
  0xcb   : > { %604 = vrot.lane.b32.xlu0 %v589_v51, %s2478_s17  ;;  %978 = vmatpush.bf16.msra.mxu1 %v2304_v48  ;;  %v2308_v54 = vld [vmem:[%s3104_s3 + $0x58] sm:$0xff] }
  0xcc   : > { %v376_v56 = vmax.f32 %v365_v53, 0.0  ;;  %v2302_v53 = vld [vmem:[%s3104_s3 + $0x28] sm:$0xff] }
  0xcd   : > { %v730_v57 = vld [vmem:[#allocation2 + $0x20] sm:$0xff] }
  0xce   : > { %v737_v58 = vpack.c.bf16 %v730_v57, %v730_v57  ;;  %384 = vst.msk [vmem:[#allocation2 + $0x28] sm:$0xff] %vm378_vm2, %v376_v56  ;;  %v681_v11 = vld [vmem:[#allocation2 + $0x1f] sm:$0xff]  ;;  %v2307_v57 = vld [vmem:[%s3104_s3 + $0x50] sm:$0xff] }
  0xcf   : > { %v2290_v62 = vld [vmem:[#allocation3 + $0x10] sm:$0xf0]  ;;  %v688_v15 = vpack.c.bf16 %v681_v11, %v681_v11 }
  0xd0   : > { %v1967_v63 = vor.u32 %v2290_v62, %v1966_v61  ;;  %744 = vst.msk [vmem:[#allocation3 + $0x20] sm:$0xf] %vm402_vm3, %v737_v58  ;;  %v583_v13 = vld [vmem:[#allocation2 + $0x19] sm:$0xff] }
  0xd1   : > { %653 = vrot.lane.b32.xlu1 %v638_v59, %s2477_s16  ;;  %v367_v0 = vpop.f32.mrf.mxu0  ;;  %577 = vst.msk [vmem:[#allocation3 + $0x28] sm:$0xf] %vm402_vm3, %v737_v58  ;;  %v590_v18 = vpack.c.bf16 %v583_v13, %v583_v13  ;;  %v463_v28 = vld [vmem:[#allocation2 + $0x1a] sm:$0xff] }
  0xd2   : > { %533 = vrot.lane.b32.xlu2 %v686_v40, %s2479_s18  ;;  %2064 = vmatmul.msk.bf16.vlgmr.msra.gmra.mxu3 %vm378_vm2, %v1967_v63  ;;  %v368_v1 = vadd.f32 %v2586_v12, %v367_v0  ;;  %407 = vst.msk [vmem:[#allocation3 + $0x30] sm:$0xf] %vm402_vm3, %v737_v58  ;;  %v632_v12 = vld [vmem:[#allocation2 + $0x1e] sm:$0xff]  ;;  %v470_v29 = vpack.c.bf16 %v463_v28, %v463_v28  ;;  %v2300_v58 = vld [vmem:[%s3104_s3 + $0x18] sm:$0xff] }
  0xd3   : > { %483 = vrot.lane.b32.xlu0 %v468_v60, %s2477_s16  ;;  %v639_v16 = vpack.c.bf16 %v632_v12, %v632_v12  ;;  %v2306_v59 = vld [vmem:[%s3104_s3 + $0x48] sm:$0xff]  ;;  %v2299_v60 = vld [vmem:[%s3104_s3 + $0x10] sm:$0xff]  ;;  %v2305_v63 = vld [vmem:[%s3104_s3 + $0x40] sm:$0xff] }
  0xd4   : > { %v377_v4 = vmax.f32 %v368_v1, 0.0  ;;  %v2298_v0 = vld [vmem:[%s3104_s3 + $0x8] sm:$0xff]  ;;  %v2297_v1 = vld [vmem:[%s3104_s3] sm:$0xff] }
  0xd5   : > { %v731_v5 = vld [vmem:[#allocation2 + $0x28] sm:$0xff]  ;;  %v733_v28 = vld [vmem:[#allocation2 + $0x38] sm:$0xff] }
  0xd6   : > { %v738_v8 = vpack.c.bf16 %v731_v5, %v731_v5  ;;  %385 = vst.msk [vmem:[#allocation2 + $0x30] sm:$0xff] %vm378_vm2, %v377_v4  ;;  %v682_v21 = vld [vmem:[#allocation2 + $0x27] sm:$0xff] }
  0xd7   : > { %v1978_v19 = vld [vmem:[#allocation3 + $0x20] sm:$0xf]  ;;  %v689_v24 = vpack.c.bf16 %v682_v21, %v682_v21 }
  0xd8   : > { %745 = vst.msk [vmem:[#allocation3 + $0x2c] sm:$0xf] %vm402_vm3, %v738_v8  ;;  %v633_v23 = vld [vmem:[#allocation2 + $0x26] sm:$0xff] }
  0xd9   : > { %531 = vrot.lane.b32.xlu1 %v517_v6, %s2479_s18  ;;  %v369_v10 = vpop.f32.mrf.mxu0  ;;  %578 = vst.msk [vmem:[#allocation3 + $0x34] sm:$0xf] %vm402_vm3, %v738_v8  ;;  %v640_v25 = vpack.c.bf16 %v633_v23, %v633_v23  ;;  %v584_v26 = vld [vmem:[#allocation2 + $0x21] sm:$0xff] }
  0xda   : > { %485 = vrot.lane.b32.xlu2 %v469_v7, %s2477_s16  ;;  %408 = vst.msk [vmem:[#allocation3 + $0x3c] sm:$0xf] %vm402_vm3, %v738_v8  ;;  %v591_v27 = vpack.c.bf16 %v584_v26, %v584_v26  ;;  %v464_v30 = vld [vmem:[#allocation2 + $0x22] sm:$0xff] }
  0xdb   : > { %435 = vrot.lane.b32.xlu0 %v589_v51, %s2478_s17  ;;  %v471_v31 = vpack.c.bf16 %v464_v30, %v464_v30  ;;  %v2303_v51 = vld [vmem:[%s3104_s3 + $0x30] sm:$0xff]  ;;  %v740_v30 = vpack.c.bf16 %v733_v28, %v733_v28 }
  0xdc   : > { %979 = vmatpush.bf16.msra.mxu1 %v2303_v51 }
  0xdd   : > { %v732_v14 = vld [vmem:[#allocation2 + $0x30] sm:$0xff]  ;;  %747 = vst.msk [vmem:[#allocation3 + $0x44] sm:$0xf] %vm402_vm3, %v740_v30 }
  0xde   : > { %v739_v17 = vpack.c.bf16 %v732_v14, %v732_v14  ;;  %v586_v32 = vld [vmem:[#allocation2 + $0x31] sm:$0xff]  ;;  %v585_v34 = vld [vmem:[#allocation2 + $0x29] sm:$0xff]  ;;  %580 = vst.msk [vmem:[#allocation3 + $0x4c] sm:$0xf] %vm402_vm3, %v740_v30 }
  0xdf   : > { %v2293_v20 = vld [vmem:[#allocation3 + $0x28] sm:$0xf0]  ;;  %v2660_v35 = vpack.c.bf16 %v586_v32, %v586_v32  ;;  %v592_v37 = vpack.c.bf16 %v585_v34, %v585_v34  ;;  %v465_v45 = vld [vmem:[#allocation2 + $0x2a] sm:$0xff]  ;;  %v636_v32 = vld [vmem:[#allocation2 + $0x3e] sm:$0xff] }
  0xe0   : > { %746 = vst.msk [vmem:[#allocation3 + $0x38] sm:$0xf] %vm402_vm3, %v739_v17  ;;  %v1979_v22 = vor.u32 %v2293_v20, %v1978_v19  ;;  %v634_v33 = vld [vmem:[#allocation2 + $0x2e] sm:$0xff]  ;;  %v684_v38 = vld [vmem:[#allocation2 + $0x37] sm:$0xff]  ;;  %v472_v46 = vpack.c.bf16 %v465_v45, %v465_v45  ;;  %980 = vmatpush.bf16.msra.mxu1 %v2302_v53 }
  0xe1   : > { %704 = vrot.lane.b32.xlu1 %v688_v15, %s2479_s18  ;;  %579 = vst.msk [vmem:[#allocation3 + $0x40] sm:$0xf] %vm402_vm3, %v739_v17  ;;  %v641_v36 = vpack.c.bf16 %v634_v33, %v634_v33  ;;  %v635_v39 = vld [vmem:[#allocation2 + $0x36] sm:$0xff]  ;;  %v2666_v41 = vpack.c.bf16 %v684_v38, %v684_v38 }
  0xe2   : > { %655 = vrot.lane.b32.xlu2 %v639_v16, %s2477_s16  ;;  %409 = vst.msk [vmem:[#allocation3 + $0x48] sm:$0xf] %vm402_vm3, %v739_v17  ;;  %2065 = vmatmul.msk.bf16.gmra.mxu3 %vm378_vm2, %v1979_v22  ;;  %v683_v40 = vld [vmem:[#allocation2 + $0x2f] sm:$0xff]  ;;  %v642_v42 = vpack.c.bf16 %v635_v39, %v635_v39 }
  0xe3   : > { %606 = vrot.lane.b32.xlu0 %v590_v18, %s2478_s17  ;;  %v690_v43 = vpack.c.bf16 %v683_v40, %v683_v40  ;;  %v466_v47 = vld [vmem:[#allocation2 + $0x32] sm:$0xff] }
  0xe4   : > { %981 = vmatpush.bf16.msra.mxu1 %v2301_v55 }
  0xe7   : > { %v1990_v45 = vld [vmem:[#allocation3 + $0x38] sm:$0xf] }
  0xe8   : > { %982 = vmatpush.bf16.msra.mxu1 %v2300_v58 }
  0xe9   : > { %437 = vrot.lane.b32.xlu1 %v590_v18, %s2478_s17 }
  0xea   : > { %706 = vrot.lane.b32.xlu2 %v689_v24, %s2479_s18 }
  0xeb   : > { %657 = vrot.lane.b32.xlu0 %v640_v25, %s2477_s16 }
  0xec   : > { %983 = vmatpush.bf16.msra.mxu1 %v2299_v60 }
  0xf0   : > { %984 = vmatpush.bf16.msra.mxu1 %v2298_v0  ;;  %v2771_v0 = vld [vmem:[%s3105_s4] ss:$0 sm:$0xff] }
  0xf1   : > { %608 = vrot.lane.b32.xlu1 %v591_v27, %s2478_s17 }
  0xf2   : > { %537 = vrot.lane.b32.xlu2 %v688_v15, %s2479_s18 }
  0xf3   : > { %487 = vrot.lane.b32.xlu0 %v470_v29, %s2477_s16 }
  0xf4   : > { %985 = vmatpush.bf16.msra.mxu1 %v2297_v1 }
  0xf9   : > { %535 = vrot.lane.b32.xlu1 %v2615_v50, %s2479_s18  ;;  %v2310_v50 = vld [vmem:[%s3104_s3 + $0x68] sm:$0xff] }
  0xfa   : > { %489 = vrot.lane.b32.xlu2 %v471_v31, %s2477_s16  ;;  %1006 = vmatpush.bf16.msra.mxu2 %v2310_v50 }
  0xfb   : > { %439 = vrot.lane.b32.xlu0 %v591_v27, %s2478_s17 }
  0xfe   : > { %1007 = vmatpush.bf16.msra.mxu2 %v2309_v52 }
 0x101   : > { %612 = vrot.lane.b32.xlu1 %v2660_v35, %s2478_s17 }
 0x102   : > { %659 = vrot.lane.b32.xlu2 %v641_v36, %s2477_s16  ;;  %1008 = vmatpush.bf16.msra.mxu2 %v2308_v54  ;;  %v643_v36 = vpack.c.bf16 %v636_v32, %v636_v32 }
 0x103   : > { %610 = vrot.lane.b32.xlu0 %v592_v37, %s2478_s17 }
 0x106   : > { %1009 = vmatpush.bf16.msra.mxu2 %v2307_v57 }
 0x109   : > { %708 = vrot.lane.b32.xlu1 %v690_v43, %s2479_s18 }
 0x10a   : > { %710 = vrot.lane.b32.xlu2 %v2666_v41, %s2479_s18  ;;  %1010 = vmatpush.bf16.msra.mxu2 %v2306_v59 }
 0x10b   : > { %661 = vrot.lane.b32.xlu0 %v642_v42, %s2477_s16 }
 0x10e   : > { %1011 = vmatpush.bf16.msra.mxu2 %v2305_v63 }
 0x111   : > { %441 = vrot.lane.b32.xlu1 %v592_v37, %s2478_s17 }
 0x112   : > { %541 = vrot.lane.b32.xlu2 %v690_v43, %s2479_s18  ;;  %v482_v49 = vpop.permute.xlu2 %481 }
 0x113   : > { %491 = vrot.lane.b32.xlu0 %v472_v46, %s2477_s16  ;;  %v2296_v46 = vld [vmem:[#allocation3 + $0x40] sm:$0xf0] }
 0x114   : > { %v1991_v48 = vor.u32 %v2296_v46, %v1990_v45 }
 0x116   : > { %2066 = vmatmul.msk.bf16.gmra.mxu3 %vm378_vm2, %v1991_v48 }
 0x119   : > { %539 = vrot.lane.b32.xlu1 %v689_v24, %s2479_s18 }
 0x11b   : > { %663 = vrot.lane.b32.xlu0 %v643_v36, %s2477_s16 }
 0x11c   : > { %v701_v56 = vpop.permute.xlu2 %700 }
 0x123   : > { %443 = vrot.lane.b32.xlu0 %v2660_v35, %s2478_s17 }
 0x124   : > { %v703_v61 = vpop.permute.xlu2 %702 }
 0x12b   : > { %v432_v62 = vpop.permute.xlu0 %431 }
 0x12c   : > { %453 = vst.msk [vmem:[#allocation3] sm:$0xf] %vm452_vm4, %v432_v62  ;;  %v534_v4 = vpop.permute.xlu2 %533  ;;  %v587_v62 = vld [vmem:[#allocation2 + $0x39] sm:$0xff] }
 0x12d   : > { %503 = vst.msk [vmem:[#allocation3] sm:$0xf] %vm502_vm5, %v482_v49  ;;  %v473_v49 = vpack.c.bf16 %v466_v47, %v466_v47  ;;  %v594_v63 = vpack.c.bf16 %v587_v62, %v587_v62 }
 0x12f   : > { %493 = vrot.lane.b32.xlu2 %v473_v49, %s2477_s16  ;;  %614 = vrot.lane.b32.xlu1 %v594_v63, %s2478_s17 }
 0x133   : > { %v652_v2 = vpop.permute.xlu1 %651 }
 0x134   : > { %v486_v7 = vpop.permute.xlu2 %485 }
 0x135   : > { %v603_v3 = vpop.permute.xlu0 %602 }
 0x136   : > { %623 = vst.msk [vmem:[#allocation3 + $0x4] sm:$0xf] %vm452_vm4, %v603_v3 }
 0x137   : > { %672 = vst.msk [vmem:[#allocation3 + $0x4] sm:$0xf] %vm502_vm5, %v652_v2 }
 0x138   : > { %721 = vst.msk [vmem:[#allocation3 + $0x4] sm:$0xf] %vm552_vm6, %v701_v56 }
 0x13b   : > { %v434_v5 = vpop.permute.xlu1 %433 }
 0x13c   : > { %454 = vst.msk [vmem:[#allocation3 + $0xc] sm:$0xf] %vm452_vm4, %v434_v5  ;;  %v656_v10 = vpop.permute.xlu2 %655 }
 0x13d   : > { %v605_v6 = vpop.permute.xlu0 %604 }
 0x13e   : > { %624 = vst.msk [vmem:[#allocation3 + $0x10] sm:$0xf] %vm452_vm4, %v605_v6 }
 0x13f   : > { %v2288_v13 = vld [vmem:[#allocation3 + $0x4] sm:$0xf] }
 0x143   : > { %v654_v8 = vpop.permute.xlu1 %653 }
 0x144   : > { %673 = vst.msk [vmem:[#allocation3 + $0x10] sm:$0xf] %vm502_vm5, %v654_v8  ;;  %v707_v16 = vpop.permute.xlu2 %706 }
 0x145   : > { %v484_v9 = vpop.permute.xlu0 %483  ;;  %722 = vst.msk [vmem:[#allocation3 + $0x10] sm:$0xf] %vm552_vm6, %v703_v61 }
 0x146   : > { %504 = vst.msk [vmem:[#allocation3 + $0xc] sm:$0xf] %vm502_vm5, %v484_v9 }
 0x147   : > { %554 = vst.msk [vmem:[#allocation3 + $0xc] sm:$0xf] %vm552_vm6, %v534_v4 }
 0x14b   : > { %v532_v11 = vpop.permute.xlu1 %531 }
 0x14c   : > { %553 = vst.msk [vmem:[#allocation3] sm:$0xf] %vm552_vm6, %v532_v11  ;;  %v1960_v14 = vld [vmem:[#allocation3 + $0xc] sm:$0xf0]  ;;  %v538_v24 = vpop.permute.xlu2 %537 }
 0x14d   : > { %v436_v12 = vpop.permute.xlu0 %435  ;;  %v1963_v15 = vor.u32 %v2288_v13, %v1960_v14 }
 0x14e   : > { %455 = vst.msk [vmem:[#allocation3 + $0x18] sm:$0xf] %vm452_vm4, %v436_v12  ;;  %v2289_v19 = vld [vmem:[#allocation3 + $0x8] sm:$0xf0] }
 0x14f   : > { %505 = vst.msk [vmem:[#allocation3 + $0x18] sm:$0xf] %vm502_vm5, %v486_v7  ;;  %1012 = vmatmul.bf16.vlgmr.msra.gmra.mxu2 %v1963_v15 }
 0x153   : > { %v705_v17 = vpop.permute.xlu1 %704  ;;  %v1958_v18 = vld [vmem:[#allocation3] sm:$0xf] }
 0x154   : > { %v1959_v21 = vor.u32 %v2289_v19, %v1958_v18  ;;  %v490_v27 = vpop.permute.xlu2 %489 }
 0x155   : > { %v607_v20 = vpop.permute.xlu0 %606  ;;  %v1039_v4 = vpop.f32.mrf.mxu3 }
 0x156   : > { %625 = vst.msk [vmem:[#allocation3 + $0x1c] sm:$0xf] %vm452_vm4, %v607_v20  ;;  %986 = vmatmul.bf16.vlgmr.msra.gmra.mxu1 %v1959_v21 }
 0x157   : > { %674 = vst.msk [vmem:[#allocation3 + $0x1c] sm:$0xf] %vm502_vm5, %v656_v10  ;;  %v1065_v10 = vld [vmem:[#allocation4] sm:$0x1] }
 0x158   : > { %723 = vst.msk [vmem:[#allocation3 + $0x1c] sm:$0xf] %vm552_vm6, %v705_v17 }
 0x15b   : > { %v438_v22 = vpop.permute.xlu1 %437 }
 0x15c   : > { %456 = vst.msk [vmem:[#allocation3 + $0x24] sm:$0xf] %vm452_vm4, %v438_v22  ;;  %v660_v38 = vpop.permute.xlu2 %659 }
 0x15d   : > { %v658_v23 = vpop.permute.xlu0 %657  ;;  %v1041_v17 = vpop.f32.mrf.mxu3 }
 0x15f   : > { %v2291_v33 = vld [vmem:[#allocation3 + $0x1c] sm:$0xf] }
 0x163   : > { %v609_v25 = vpop.permute.xlu1 %608 }
 0x164   : > { %626 = vst.msk [vmem:[#allocation3 + $0x28] sm:$0xf] %vm452_vm4, %v609_v25  ;;  %v711_v50 = vpop.permute.xlu2 %710 }
 0x165   : > { %v488_v26 = vpop.permute.xlu0 %487  ;;  %675 = vst.msk [vmem:[#allocation3 + $0x28] sm:$0xf] %vm502_vm5, %v658_v23 }
 0x166   : > { %724 = vst.msk [vmem:[#allocation3 + $0x28] sm:$0xf] %vm552_vm6, %v707_v16 }
 0x167   : > { %506 = vst.msk [vmem:[#allocation3 + $0x24] sm:$0xf] %vm502_vm5, %v488_v26 }
 0x168   : > { %556 = vst.msk [vmem:[#allocation3 + $0x24] sm:$0xf] %vm552_vm6, %v538_v24 }
 0x16b   : > { %v536_v29 = vpop.permute.xlu1 %535 }
 0x16c   : > { %555 = vst.msk [vmem:[#allocation3 + $0x18] sm:$0xf] %vm552_vm6, %v536_v29  ;;  %v542_v35 = vpop.permute.xlu2 %541 }
 0x16d   : > { %v440_v31 = vpop.permute.xlu0 %439  ;;  %v1972_v34 = vld [vmem:[#allocation3 + $0x24] sm:$0xf0] }
 0x16e   : > { %457 = vst.msk [vmem:[#allocation3 + $0x30] sm:$0xf] %vm452_vm4, %v440_v31  ;;  %v1975_v37 = vor.u32 %v2291_v33, %v1972_v34  ;;  %v1117_v33 = vld [vmem:[#allocation4 + $0x1] sm:$0x1] }
 0x16f   : > { %507 = vst.msk [vmem:[#allocation3 + $0x30] sm:$0xf] %vm502_vm5, %v490_v27  ;;  %v2292_v42 = vld [vmem:[#allocation3 + $0x20] sm:$0xf0]  ;;  %v1044_v27 = vpop.f32.mrf.mxu3 }
 0x170   : > { %1017 = vmatmul.bf16.gmra.mxu2 %v1975_v37 }
 0x173   : > { %v613_v39 = vpop.permute.xlu1 %612  ;;  %v1970_v40 = vld [vmem:[#allocation3 + $0x18] sm:$0xf] }
 0x174   : > { %628 = vst.msk [vmem:[#allocation3 + $0x40] sm:$0xf] %vm452_vm4, %v613_v39  ;;  %v1971_v44 = vor.u32 %v2292_v42, %v1970_v40 }
 0x175   : > { %v611_v43 = vpop.permute.xlu0 %610 }
 0x176   : > { %627 = vst.msk [vmem:[#allocation3 + $0x34] sm:$0xf] %vm452_vm4, %v611_v43  ;;  %991 = vmatmul.bf16.gmra.mxu1 %v1971_v44  ;;  %v1200_v44 = vld [vmem:[#allocation4 + $0x3] sm:$0x1] }
 0x177   : > { %676 = vst.msk [vmem:[#allocation3 + $0x34] sm:$0xf] %vm502_vm5, %v660_v38  ;;  %v1046_v34 = vpop.f32.mrf.mxu3 }
 0x17b   : > { %v709_v51 = vpop.permute.xlu1 %708 }
 0x17c   : > { %725 = vst.msk [vmem:[#allocation3 + $0x34] sm:$0xf] %vm552_vm6, %v709_v51 }
 0x17d   : > { %v662_v52 = vpop.permute.xlu0 %661 }
 0x17e   : > { %677 = vst.msk [vmem:[#allocation3 + $0x40] sm:$0xf] %vm502_vm5, %v662_v52 }
 0x17f   : > { %726 = vst.msk [vmem:[#allocation3 + $0x40] sm:$0xf] %vm552_vm6, %v711_v50 }
 0x183   : > { %v442_v53 = vpop.permute.xlu1 %441  ;;  %v2294_v54 = vld [vmem:[#allocation3 + $0x34] sm:$0xf] }
 0x184   : > { %458 = vst.msk [vmem:[#allocation3 + $0x3c] sm:$0xf] %vm452_vm4, %v442_v53 }
 0x185   : > { %v492_v55 = vpop.permute.xlu0 %491 }
 0x186   : > { %508 = vst.msk [vmem:[#allocation3 + $0x3c] sm:$0xf] %vm502_vm5, %v492_v55  ;;  %v1984_v56 = vld [vmem:[#allocation3 + $0x3c] sm:$0xf0] }
 0x187   : > { %558 = vst.msk [vmem:[#allocation3 + $0x3c] sm:$0xf] %vm552_vm6, %v542_v35  ;;  %v1987_v57 = vor.u32 %v2294_v54, %v1984_v56  ;;  %v1160_v56 = vld [vmem:[#allocation4 + $0x2] sm:$0x1] }
 0x189   : > { %1022 = vmatmul.bf16.gmra.mxu2 %v1987_v57  ;;  %v494_v29 = vpop.permute.xlu2 %493 }
 0x18b   : > { %v540_v58 = vpop.permute.xlu1 %539 }
 0x18c   : > { %557 = vst.msk [vmem:[#allocation3 + $0x30] sm:$0xf] %vm552_vm6, %v540_v58 }
 0x18d   : > { %v2783_v22 = vpop.permute.xlu0 %663 }
 0x18e   : > { %v2295_v60 = vld [vmem:[#allocation3 + $0x38] sm:$0xf0] }
 0x193   : > { %v1982_v59 = vld [vmem:[#allocation3 + $0x30] sm:$0xf] }
 0x194   : > { %v1983_v61 = vor.u32 %v2295_v60, %v1982_v59 }
 0x195   : > { %v444_v28 = vpop.permute.xlu0 %443 }
 0x196   : > { %996 = vmatmul.bf16.gmra.mxu1 %v1983_v61  ;;  %459 = vst.msk [vmem:[#allocation3 + $0x48] sm:$0xf] %vm452_vm4, %v444_v28 }
 0x197   : > { %509 = vst.msk [vmem:[#allocation3 + $0x48] sm:$0xf] %vm502_vm5, %v494_v29 }
 0x199   : > { %v1049_v47 = vpop.f32.mrf.mxu3 }
 0x1a1   : > { %v1051_v58 = vpop.f32.mrf.mxu3 }
 0x1a2   : > { %v2321_v58 = vld [vmem:[%s3106_s5 + $0x30] sm:$0xff] }
 0x1d2   : > { %v1013_v1 = vpop.f32.mrf.mxu2 }
 0x1d3   : > { %v987_v2 = vpop.f32.mrf.mxu1 }
 0x1d4   : > { %v988_v3 = vadd.f32 %v2771_v0, %v987_v2 }
 0x1d6   : > { %v1014_v5 = vadd.f32 %v1013_v1, %v988_v3 }
 0x1d8   : > { %v1040_v6 = vadd.f32 %v1039_v4, %v1014_v5 }
 0x1da   : > { %v1056_v7 = vmax.f32 %v1040_v6, 0.0  ;;  %v1015_v13 = vpop.f32.mrf.mxu2 }
 0x1db   : > { %v989_v8 = vpop.f32.mrf.mxu1 }
 0x1dc   : > { %v1061_v11 = vpack.c.bf16 %v1056_v7, %v1056_v7  ;;  %v990_v12 = vadd.f32 %v2771_v0, %v989_v8 }
 0x1de   : > { %1086 = vst [vmem:[#allocation1] sm:$0xff] %v1061_v11  ;;  %v1016_v14 = vadd.f32 %v1015_v13, %v990_v12  ;;  %v1069_v15 = vrot.slane %v1061_v11, 3  ;;  %v1066_v16 = vsel %vm2775_vm9, %v1061_v11, %v1065_v10  ;;  %v1328_v12 = vld [vmem:[#allocation4 + $0x6] sm:$0x1] }
 0x1df   : > { %1067 = vst [vmem:[#allocation4] sm:$0x1] %v1066_v16 }
 0x1e0   : > { %v1042_v18 = vadd.f32 %v1041_v17, %v1016_v14  ;;  %v1073_v19 = vsel %vm1070_vm10, %v1061_v11, %v1069_v15 }
 0x1e1   : > { %v1074_v20 = vshrl.u32 %v1073_v19, 16 }
 0x1e2   : > { %v1057_v21 = vmax.f32 %v1042_v18, 0.0 }
 0x1e3   : > { %1078 = vrot.lane.b32.xlu0 %v1074_v20, %s2478_s17 }
 0x1e4   : > { %v2786_v23 = vpack.c.bf16 %v1057_v21, %v1057_v21  ;;  %v1245_v21 = vld [vmem:[#allocation4 + $0x4] sm:$0x1] }
 0x1e5   : > { %v1088_v24 = vld [vmem:[#allocation1 + $0x1] ss:$4 sm:$0xff] }
 0x1e6   : > { %1098 = vst [vmem:[#allocation1] sm:$0xff] %v1061_v11  ;;  %v1135_v25 = vrot.slane %v2786_v23, 3 }
 0x1e8   : > { %v2791_v26 = vsel %vm1070_vm10, %v2786_v23, %v1135_v25  ;;  %v615_v25 = vpop.permute.xlu1 %614 }
 0x1e9   : > { %1140 = vrot.lane.b32.xlu1 %v2791_v26, %s2477_s16  ;;  %629 = vst.msk [vmem:[#allocation3 + $0x4c] sm:$0xf] %vm452_vm4, %v615_v25  ;;  %v2326_v25 = vld [vmem:[%s3106_s5 + $0x58] sm:$0xff] }
 0x1ea   : > { %678 = vst.msk [vmem:[#allocation3 + $0x4c] sm:$0xf] %vm502_vm5, %v2783_v22  ;;  %v1146_v22 = vshrl.u32 %v2791_v26, 16 }
 0x1eb   : > { %1090 = vrot.lane.b32.xlu0 %v1088_v24, %s2477_s16 }
 0x1ed   : > { %v2798_v30 = vld [vmem:[#allocation1 + $0x1] ss:$4 sm:$0xff] }
 0x1ee   : > { %1113 = vst [vmem:[#allocation1] sm:$0xff] %v1061_v11  ;;  %v1101_v19 = vshrl.u32 %v2798_v30, 16  ;;  %v1288_v30 = vld [vmem:[#allocation4 + $0x5] sm:$0x1] }
 0x1f3   : > { %v992_v31 = vpop.f32.mrf.mxu1  ;;  %v1018_v32 = vpop.f32.mrf.mxu2 }
 0x1f4   : > { %v993_v36 = vadd.f32 %v2771_v0, %v992_v31 }
 0x1f5   : > { %v1115_v37 = vld [vmem:[#allocation1 + $0x2] ss:$4 sm:$0xff] }
 0x1f6   : > { %1120 = vst [vmem:[#allocation1] sm:$0xff] %v1061_v11  ;;  %v1019_v38 = vadd.f32 %v1018_v32, %v993_v36  ;;  %v1118_v39 = vsel %vm2775_vm9, %v1115_v37, %v1117_v33  ;;  %v1083_v37 = vld [vmem:[#allocation4] sm:$0x1]  ;;  %v2352_v36 = vld [vmem:[%s3106_s5 + $0x128] sm:$0xff] }
 0x1f7   : > { %1119 = vst [vmem:[#allocation4 + $0x1] sm:$0x1] %v1118_v39 }
 0x1f8   : > { %v1045_v40 = vadd.f32 %v1044_v27, %v1019_v38 }
 0x1fa   : > { %v1058_v42 = vmax.f32 %v1045_v40, 0.0 }
 0x1fb   : > { %v994_v43 = vpop.f32.mrf.mxu1  ;;  %v1020_v49 = vpop.f32.mrf.mxu2 }
 0x1fc   : > { %v1199_v45 = vpack.c.bf16 %v1058_v42, %v1058_v42  ;;  %v995_v46 = vadd.f32 %v2771_v0, %v994_v43 }
 0x1fd   : > { %v1122_v48 = vld [vmem:[#allocation1 + $0x3] ss:$4 sm:$0xff] }
 0x1fe   : > { %1156 = vst [vmem:[#allocation1] sm:$0xff] %v2786_v23  ;;  %v1021_v50 = vadd.f32 %v1020_v49, %v995_v46  ;;  %v1204_v51 = vrot.slane %v1199_v45, 3  ;;  %v1201_v52 = vsel %vm2775_vm9, %v1199_v45, %v1200_v44  ;;  %v1123_v3 = vshrl.u32 %v1122_v48, 16 }
 0x1ff   : > { %1202 = vst [vmem:[#allocation4 + $0x3] sm:$0x1] %v1201_v52 }
 0x200   : > { %v1047_v53 = vadd.f32 %v1046_v34, %v1021_v50  ;;  %v1207_v54 = vsel %vm1070_vm10, %v1199_v45, %v1204_v51 }
 0x201   : > { %v1208_v55 = vshrl.u32 %v1207_v54, 16 }
 0x202   : > { %v1059_v35 = vmax.f32 %v1047_v53, 0.0 }
 0x203   : > { %1212 = vrot.lane.b32.xlu0 %v1208_v55, %s2478_s17 }
 0x204   : > { %v2809_v57 = vpack.c.bf16 %v1059_v35, %v1059_v35 }
 0x205   : > { %v1158_v59 = vld [vmem:[#allocation1 + $0x1] ss:$4 sm:$0xff] }
 0x206   : > { %1163 = vst [vmem:[#allocation1] sm:$0xff] %v2786_v23  ;;  %v1263_v60 = vrot.slane %v2809_v57, 3  ;;  %v1161_v61 = vsel %vm2775_vm9, %v1158_v59, %v1160_v56  ;;  %v1215_v54 = vld [vmem:[#allocation4 + $0x3] sm:$0x1]  ;;  %v2322_v56 = vld [vmem:[%s3106_s5 + $0x38] sm:$0xff] }
 0x207   : > { %1162 = vst [vmem:[#allocation4 + $0x2] sm:$0x1] %v1161_v61  ;;  %1750 = vmatpush.bf16.msrb.mxu3 %v2322_v56  ;;  %v2330_v59 = vld [vmem:[%s3106_s5 + $0x78] sm:$0xff] }
 0x208   : > { %v2817_v62 = vsel %vm1070_vm10, %v2809_v57, %v1263_v60  ;;  %v2338_v60 = vld [vmem:[%s3106_s5 + $0xb8] sm:$0xff]  ;;  %1763 = vmatpush.bf16.msrb.mxu0 %v2330_v59  ;;  %v2340_v59 = vld [vmem:[%s3106_s5 + $0xc8] sm:$0xff] }
 0x209   : > { %1268 = vrot.lane.b32.xlu1 %v2817_v62, %s2477_s16  ;;  %1776 = vmatpush.bf16.msrb.mxu1 %v2338_v60  ;;  %v2360_v60 = vld [vmem:[%s3106_s5 + $0x168] sm:$0xff] }
 0x20b   : > { %1751 = vmatpush.bf16.msrb.mxu3 %v2321_v58  ;;  %v2332_v58 = vld [vmem:[%s3106_s5 + $0x88] sm:$0xff] }
 0x20c   : > { %v1023_v63 = vpop.f32.mrf.mxu2 }
 0x20d   : > { %v1165_v1 = vld [vmem:[#allocation1 + $0x1] ss:$4 sm:$0xff] }
 0x20e   : > { %1176 = vst [vmem:[#allocation1] sm:$0xff] %v2786_v23  ;;  %v1166_v2 = vshrl.u32 %v1165_v1, 16  ;;  %v1173_v48 = vld [vmem:[#allocation4 + $0x2] sm:$0x1] }
 0x210   : > { %1170 = vrot.lane.b32.xlu2 %v1166_v2, %s2478_s17  ;;  %v2346_v2 = vld [vmem:[%s3106_s5 + $0xf8] sm:$0xff] }
 0x211   : > { %1127 = vrot.lane.b32.xlu1 %v1123_v3, %s2478_s17  ;;  %1789 = vmatpush.bf16.msrb.mxu2 %v2346_v2 }
 0x213   : > { %v997_v5 = vpop.f32.mrf.mxu1 }
 0x214   : > { %v1025_v4 = vpop.f32.mrf.mxu2  ;;  %v998_v6 = vadd.f32 %v2771_v0, %v997_v5  ;;  %v685_v0 = vld [vmem:[#allocation2 + $0x3f] sm:$0xff]  ;;  %v2329_v5 = vld [vmem:[%s3106_s5 + $0x70] sm:$0xff] }
 0x215   : > { %v1178_v7 = vld [vmem:[#allocation1 + $0x3] ss:$4 sm:$0xff]  ;;  %v692_v18 = vpack.c.bf16 %v685_v0, %v685_v0  ;;  %1764 = vmatpush.bf16.msrb.mxu0 %v2329_v5 }
 0x216   : > { %v1024_v8 = vadd.f32 %v1023_v63, %v998_v6  ;;  %1186 = vst [vmem:[#allocation1] sm:$0xff] %v2786_v23  ;;  %v2320_v4 = vld [vmem:[%s3106_s5 + $0x28] sm:$0xff] }
 0x217   : > { %1752 = vmatpush.bf16.msrb.mxu3 %v2320_v4  ;;  %v2344_v0 = vld [vmem:[%s3106_s5 + $0xe8] sm:$0xff] }
 0x218   : > { %v1050_v10 = vadd.f32 %v1049_v47, %v1024_v8  ;;  %1180 = vrot.lane.b32.xlu2 %v1178_v7, %s2477_s16  ;;  %v2337_v7 = vld [vmem:[%s3106_s5 + $0xb0] sm:$0xff] }
 0x219   : > { %v2345_v8 = vld [vmem:[%s3106_s5 + $0xf0] sm:$0xff]  ;;  %1777 = vmatpush.bf16.msrb.mxu1 %v2337_v7 }
 0x21a   : > { %v1060_v11 = vmax.f32 %v1050_v10, 0.0  ;;  %1790 = vmatpush.bf16.msrb.mxu2 %v2345_v8  ;;  %v2350_v8 = vld [vmem:[%s3106_s5 + $0x118] sm:$0xff] }
 0x21b   : > { %v999_v13 = vpop.f32.mrf.mxu1 }
 0x21c   : > { %v1327_v14 = vpack.c.bf16 %v1060_v11, %v1060_v11 }
 0x21d   : > { %v1188_v15 = vld [vmem:[#allocation1 + $0x3] ss:$4 sm:$0xff] }
 0x21e   : > { %v1329_v16 = vsel %vm2775_vm9, %v1327_v14, %v1328_v12  ;;  %1218 = vst [vmem:[#allocation1] sm:$0xff] %v1199_v45  ;;  %v1189_v43 = vshrl.u32 %v1188_v15, 16  ;;  %v734_v12 = vld [vmem:[#allocation2 + $0x40] sm:$0xff]  ;;  %1791 = vmatpush.bf16.msrb.mxu2 %v2344_v0 }
 0x21f   : > { %1330 = vst [vmem:[#allocation4 + $0x6] sm:$0x1] %v1329_v16  ;;  %v2328_v14 = vld [vmem:[%s3106_s5 + $0x68] sm:$0xff]  ;;  %v741_v15 = vpack.c.bf16 %v734_v12, %v734_v12  ;;  %v2319_v16 = vld [vmem:[%s3106_s5 + $0x20] sm:$0xff]  ;;  %v2357_v12 = vld [vmem:[%s3106_s5 + $0x150] sm:$0xff] }
 0x220   : > { %712 = vrot.lane.b32.xlu2 %v692_v18, %s2479_s18  ;;  %1765 = vmatpush.bf16.msrb.mxu0 %v2328_v14 }
 0x221   : > { %748 = vst.msk [vmem:[#allocation3 + $0x50] sm:$0xf] %vm402_vm3, %v741_v15  ;;  %1753 = vmatpush.bf16.msrb.mxu3 %v2319_v16 }
 0x225   : > { %v1220_v17 = vld [vmem:[#allocation1 + $0x1] ss:$4 sm:$0xff] }
 0x226   : > { %1228 = vst [vmem:[#allocation1] sm:$0xff] %v1199_v45  ;;  %1222 = vrot.lane.b32.xlu0 %v1220_v17, %s2477_s16  ;;  %v2336_v17 = vld [vmem:[%s3106_s5 + $0xa8] sm:$0xff] }
 0x227   : > { %1778 = vmatpush.bf16.msrb.mxu1 %v2336_v17  ;;  %v2363_v17 = vld [vmem:[%s3106_s5 + $0x180] sm:$0xff] }
 0x22d   : > { %v1230_v20 = vld [vmem:[#allocation1 + $0x2] ss:$4 sm:$0xff] }
 0x22e   : > { %1105 = vrot.lane.b32.xlu0 %v1101_v19, %s2479_s18  ;;  %1241 = vst [vmem:[#allocation1] sm:$0xff] %v1199_v45  ;;  %v1231_v23 = vshrl.u32 %v1230_v20, 16  ;;  %v2327_v19 = vld [vmem:[%s3106_s5 + $0x60] sm:$0xff]  ;;  %v2318_v20 = vld [vmem:[%s3106_s5 + $0x18] sm:$0xff] }
 0x22f   : > { %1766 = vmatpush.bf16.msrb.mxu0 %v2327_v19  ;;  %1754 = vmatpush.bf16.msrb.mxu3 %v2318_v20 }
 0x233   : > { %1767 = vmatpush.bf16.msrb.mxu0 %v2326_v25  ;;  %v2348_v25 = vld [vmem:[%s3106_s5 + $0x108] sm:$0xff] }
 0x235   : > { %v1243_v24 = vld [vmem:[#allocation1 + $0x3] ss:$4 sm:$0xff] }
 0x236   : > { %1235 = vrot.lane.b32.xlu0 %v1231_v23, %s2479_s18  ;;  %1248 = vst [vmem:[#allocation1] sm:$0xff] %v1199_v45  ;;  %v1246_v27 = vsel %vm2775_vm9, %v1243_v24, %v1245_v21  ;;  %v2335_v21 = vld [vmem:[%s3106_s5 + $0xa0] sm:$0xff] }
 0x237   : > { %1247 = vst [vmem:[#allocation4 + $0x4] sm:$0x1] %v1246_v27  ;;  %v2343_v27 = vld [vmem:[%s3106_s5 + $0xe0] sm:$0xff]  ;;  %1779 = vmatpush.bf16.msrb.mxu1 %v2335_v21 }
 0x238   : > { %1792 = vmatpush.bf16.msrb.mxu2 %v2343_v27  ;;  %v2356_v27 = vld [vmem:[%s3106_s5 + $0x148] sm:$0xff] }
 0x23d   : > { %v1250_v28 = vld [vmem:[#allocation1 + $0x3] ss:$4 sm:$0xff] }
 0x23e   : > { %v1251_v29 = vshrl.u32 %v1250_v28, 16  ;;  %1284 = vst [vmem:[#allocation1] sm:$0xff] %v2809_v57 }
 0x240   : > { %1255 = vrot.lane.b32.xlu1 %v1251_v29, %s2478_s17  ;;  %v762_v29 = vld [vmem:[#allocation3 + $0x50] sm:$0xf] }
 0x245   : > { %v1286_v31 = vld [vmem:[#allocation1 + $0x2] ss:$4 sm:$0xff] }
 0x246   : > { %1291 = vst [vmem:[#allocation1] sm:$0xff] %v2809_v57  ;;  %v1289_v32 = vsel %vm2775_vm9, %v1286_v31, %v1288_v30  ;;  %v837_v30 = vunpack.c.l.b16 %v762_v29  ;;  %v2355_v29 = vld [vmem:[%s3106_s5 + $0x140] sm:$0xff] }
 0x247   : > { %1290 = vst [vmem:[#allocation4 + $0x5] sm:$0x1] %v1289_v32  ;;  %v2317_v32 = vld [vmem:[%s3106_s5 + $0x10] sm:$0xff] }
 0x248   : > { %543 = vrot.lane.b32.xlu1 %v2666_v41, %s2479_s18  ;;  %v1274_v41 = vshrl.u32 %v2817_v62, 16  ;;  %v1130_v62 = vld [vmem:[#allocation4 + $0x1] sm:$0x1]  ;;  %v849_v31 = vpack.c.b16 %v837_v30, %v837_v30  ;;  %1755 = vmatpush.bf16.msrb.mxu3 %v2317_v32 }
 0x24a   : > { %2067 = vmatmul.msk.bf16.gmra.mxu3 %vm378_vm2, %v849_v31 }
 0x24d   : > { %v1293_v33 = vld [vmem:[#allocation1 + $0x2] ss:$4 sm:$0xff] }
 0x24e   : > { %v1294_v34 = vshrl.u32 %v1293_v33, 16  ;;  %1304 = vst [vmem:[#allocation1] sm:$0xff] %v2809_v57  ;;  %v2325_v33 = vld [vmem:[%s3106_s5 + $0x50] sm:$0xff] }
 0x24f   : > { %1768 = vmatpush.bf16.msrb.mxu0 %v2325_v33 }
 0x250   : > { %1298 = vrot.lane.b32.xlu2 %v1294_v34, %s2478_s17  ;;  %1150 = vrot.lane.b32.xlu1 %v1146_v22, %s2479_s18  ;;  %v2334_v22 = vld [vmem:[%s3106_s5 + $0x98] sm:$0xff]  ;;  %s2433_s17 = scalar_lea.hbm %s3108_s7, 2 }
 0x251   : > { %1780 = vmatpush.bf16.msrb.mxu1 %v2334_v22  ;;  %v2342_v34 = vld [vmem:[%s3106_s5 + $0xd8] sm:$0xff]  ;;  %p2435_p1 = scmp.lt.s32.totalorder %s2433_s17, %s2429_s19 }
 0x252   : > { %1793 = vmatpush.bf16.msrb.mxu2 %v2342_v34 }
 0x253   : > { %p2436_p2 = por %p2435_p1, %p2434_p0 }
 0x255   : > { %v1079_v9 = vpop.permute.xlu0 %1078  ;;  %v1306_v38 = vld [vmem:[#allocation1 + $0x3] ss:$4 sm:$0xff]  ;;  %p2437_p3 = pnand %p2436_p2, %p2432_p13 }
 0x256   : > { %v1084_v26 = vsel %vm2851_vm12, %v1079_v9, %v1083_v37  ;;  %1314 = vst [vmem:[#allocation1] sm:$0xff] %v2809_v57 }
 0x257   : > { %1085 = vst [vmem:[#allocation4] sm:$0x1] %v1084_v26 }
 0x258   : > { %1308 = vrot.lane.b32.xlu2 %v1306_v38, %s2477_s16  ;;  %1278 = vrot.lane.b32.xlu1 %v1274_v41, %s2479_s18  ;;  %v2316_v38 = vld [vmem:[%s3106_s5 + $0x8] sm:$0xff] }
 0x259   : > { %v2324_v41 = vld [vmem:[%s3106_s5 + $0x48] sm:$0xff]  ;;  %1756 = vmatpush.bf16.msrb.mxu3 %v2316_v38 }
 0x25a   : > { %1769 = vmatpush.bf16.msrb.mxu0 %v2324_v41 }
 0x25b   : > { %v1141_v51 = vpop.permute.xlu1 %1140 }
 0x25d   : > { %v1091_v40 = vpop.permute.xlu0 %1090  ;;  %v1316_v45 = vld [vmem:[#allocation1 + $0x3] ss:$4 sm:$0xff] }
 0x25e   : > { %v1095_v42 = vld [vmem:[#allocation4] sm:$0x1]  ;;  %v1317_v46 = vshrl.u32 %v1316_v45, 16 }
 0x25f   : > { %v1096_v44 = vsel %vm2862_vm14, %v1091_v40, %v1095_v42  ;;  %v1301_v40 = vld [vmem:[#allocation4 + $0x5] sm:$0x1]  ;;  %v2323_v45 = vld [vmem:[%s3106_s5 + $0x40] sm:$0xff] }
 0x260   : > { %1097 = vst [vmem:[#allocation4] sm:$0x1] %v1096_v44  ;;  %1193 = vrot.lane.b32.xlu2 %v1189_v43, %s2479_s18  ;;  %v2315_v44 = vld [vmem:[%s3106_s5] sm:$0xff]  ;;  %1770 = vmatpush.bf16.msrb.mxu0 %v2323_v45 }
 0x261   : > { %1757 = vmatpush.bf16.msrb.mxu3 %v2315_v44 }
 0x267   : > { %v1110_v24 = vld [vmem:[#allocation4] sm:$0x1] }
 0x268   : > { %1321 = vrot.lane.b32.xlu2 %v1317_v46, %s2479_s18  ;;  %v2354_v46 = vld [vmem:[%s3106_s5 + $0x138] sm:$0xff] }
 0x269   : > { %1802 = vmatpush.bf16.msra.mxu3 %v2354_v46 }
 0x26a   : > { %v1171_v47 = vpop.permute.xlu2 %1170 }
 0x26b   : > { %v1174_v49 = vsel %vm2851_vm12, %v1171_v47, %v1173_v48  ;;  %v2362_v47 = vld [vmem:[%s3106_s5 + $0x178] sm:$0xff]  ;;  %v1258_v48 = vld [vmem:[#allocation4 + $0x4] sm:$0x1] }
 0x26c   : > { %1175 = vst [vmem:[#allocation4 + $0x2] sm:$0x1] %v1174_v49  ;;  %1815 = vmatpush.bf16.msra.mxu0 %v2362_v47 }
 0x272   : > { %v1181_v50 = vpop.permute.xlu2 %1180 }
 0x273   : > { %v1183_v52 = vld [vmem:[#allocation4 + $0x2] sm:$0x1] }
 0x274   : > { %v1184_v53 = vsel %vm2862_vm14, %v1181_v50, %v1183_v52  ;;  %v2341_v52 = vld [vmem:[%s3106_s5 + $0xd0] sm:$0xff] }
 0x275   : > { %1185 = vst [vmem:[#allocation4 + $0x2] sm:$0x1] %v1184_v53  ;;  %v1213_v55 = vpop.permute.xlu0 %1212  ;;  %v2353_v53 = vld [vmem:[%s3106_s5 + $0x130] sm:$0xff]  ;;  %1794 = vmatpush.bf16.msrb.mxu2 %v2341_v52 }
 0x276   : > { %v1216_v35 = vsel %vm2851_vm12, %v1213_v55, %v1215_v54  ;;  %1803 = vmatpush.bf16.msra.mxu3 %v2353_v53 }
 0x277   : > { %1217 = vst [vmem:[#allocation4 + $0x3] sm:$0x1] %v1216_v35  ;;  %v2361_v35 = vld [vmem:[%s3106_s5 + $0x170] sm:$0xff] }
 0x278   : > { %1816 = vmatpush.bf16.msra.mxu0 %v2361_v35 }
 0x279   : > { %1795 = vmatpush.bf16.msrb.mxu2 %v2340_v59 }
 0x27a   : > { %v713_v63 = vpop.permute.xlu2 %712  ;;  %1804 = vmatpush.bf16.msra.mxu3 %v2352_v36 }
 0x27b   : > { %v2879_v57 = vpop.permute.xlu1 %1268  ;;  %727 = vst.msk [vmem:[#allocation3 + $0x4c] sm:$0xf] %vm552_vm6, %v713_v63  ;;  %v2351_v63 = vld [vmem:[%s3106_s5 + $0x120] sm:$0xff] }
 0x27c   : > { %1817 = vmatpush.bf16.msra.mxu0 %v2360_v60 }
 0x27e   : > { %v1225_v10 = vld [vmem:[#allocation4 + $0x3] sm:$0x1]  ;;  %1805 = vmatpush.bf16.msra.mxu3 %v2351_v63 }
 0x282   : > { %1806 = vmatpush.bf16.msra.mxu3 %v2350_v8 }
 0x283   : > { %v1128_v61 = vpop.permute.xlu1 %1127 }
 0x284   : > { %v1131_v1 = vsel %vm2851_vm12, %v1128_v61, %v1130_v62  ;;  %v2331_v61 = vld [vmem:[%s3106_s5 + $0x80] sm:$0xff] }
 0x285   : > { %1132 = vst [vmem:[#allocation4 + $0x1] sm:$0x1] %v1131_v1  ;;  %v2339_v62 = vld [vmem:[%s3106_s5 + $0xc0] sm:$0xff] }
 0x286   : > { %v2359_v1 = vld [vmem:[%s3106_s5 + $0x160] sm:$0xff]  ;;  %1796 = vmatpush.bf16.msrb.mxu2 %v2339_v62 }
 0x287   : > { %1818 = vmatpush.bf16.msra.mxu0 %v2359_v1 }
 0x28c   : > { %v1143_v3 = vld [vmem:[#allocation4 + $0x1] sm:$0x1] }
 0x28d   : > { %v1144_v6 = vsel %vm2862_vm14, %v1141_v51, %v1143_v3  ;;  %v2333_v51 = vld [vmem:[%s3106_s5 + $0x90] sm:$0xff]  ;;  %v1196_v3 = vld [vmem:[#allocation4 + $0x2] sm:$0x1] }
 0x28e   : > { %1145 = vst [vmem:[#allocation4 + $0x1] sm:$0x1] %v1144_v6  ;;  %1781 = vmatpush.bf16.msrb.mxu1 %v2333_v51 }
 0x292   : > { %1782 = vmatpush.bf16.msrb.mxu1 %v2332_v58 }
 0x295   : > { %v1153_v39 = vld [vmem:[#allocation4 + $0x1] sm:$0x1] }
 0x296   : > { %1783 = vmatpush.bf16.msrb.mxu1 %v2331_v61 }
 0x298   : > { %v1223_v11 = vpop.permute.xlu0 %1222 }
 0x299   : > { %v1226_v13 = vsel %vm2862_vm14, %v1223_v11, %v1225_v10  ;;  %v2358_v10 = vld [vmem:[%s3106_s5 + $0x158] sm:$0xff]  ;;  %v2364_v11 = vld [vmem:[%s3106_s5 + $0x188] sm:$0xff] }
 0x29a   : > { %1227 = vst [vmem:[#allocation4 + $0x3] sm:$0x1] %v1226_v13  ;;  %1819 = vmatpush.bf16.msra.mxu0 %v2358_v10  ;;  %1834 = vmatpush.bf16.msra.mxu1 %v2364_v11 }
 0x29e   : > { %1820 = vmatpush.bf16.msra.mxu0 %v2357_v12  ;;  %1835 = vmatpush.bf16.msra.mxu1 %v2363_v17 }
 0x2a0   : > { %v1106_v23 = vpop.permute.xlu0 %1105 }
 0x2a1   : > { %v1111_v28 = vsel %vm2926_vm0, %v1106_v23, %v1110_v24  ;;  %v1238_v9 = vld [vmem:[#allocation4 + $0x3] sm:$0x1] }
 0x2a2   : > { %1112 = vst [vmem:[#allocation4] sm:$0x1] %v1111_v28  ;;  %1821 = vmatpush.bf16.msra.mxu0 %v2356_v27  ;;  %v2347_v28 = vld [vmem:[%s3106_s5 + $0x100] sm:$0xff] }
 0x2a6   : > { %1822 = vmatpush.bf16.msra.mxu0 %v2355_v29 }
 0x2a8   : > { %v1236_v37 = vpop.permute.xlu0 %1235 }
 0x2a9   : > { %v1239_v26 = vsel %vm2926_vm0, %v1236_v37, %v1238_v9 }
 0x2aa   : > { %1240 = vst [vmem:[#allocation4 + $0x3] sm:$0x1] %v1239_v26  ;;  %v1299_v42 = vpop.permute.xlu2 %1298 }
 0x2ab   : > { %v1302_v43 = vsel %vm2851_vm12, %v1299_v42, %v1301_v40 }
 0x2ac   : > { %1303 = vst [vmem:[#allocation4 + $0x5] sm:$0x1] %v1302_v43 }
 0x2b2   : > { %v1309_v49 = vpop.permute.xlu2 %1308  ;;  %v1256_v50 = vpop.permute.xlu1 %1255 }
 0x2b3   : > { %v1311_v54 = vld [vmem:[#allocation4 + $0x5] sm:$0x1]  ;;  %v1259_v55 = vsel %vm2851_vm12, %v1256_v50, %v1258_v48  ;;  %v1432_v48 = vld [vmem:[%s3107_s6] sm:$0x1] }
 0x2b4   : > { %v1312_v56 = vsel %vm2862_vm14, %v1309_v49, %v1311_v54  ;;  %1260 = vst [vmem:[#allocation4 + $0x4] sm:$0x1] %v1259_v55 }
 0x2b5   : > { %1313 = vst [vmem:[#allocation4 + $0x5] sm:$0x1] %v1312_v56 }
 0x2ba   : > { %v1194_v2 = vpop.permute.xlu2 %1193  ;;  %v544_v4 = vpop.permute.xlu1 %543 }
 0x2bb   : > { %v1271_v5 = vld [vmem:[#allocation4 + $0x4] sm:$0x1]  ;;  %v1197_v6 = vsel %vm2926_vm0, %v1194_v2, %v1196_v3  ;;  %559 = vst.msk [vmem:[#allocation3 + $0x48] sm:$0xf] %vm552_vm6, %v544_v4 }
 0x2bc   : > { %v1272_v7 = vsel %vm2862_vm14, %v2879_v57, %v1271_v5  ;;  %1198 = vst [vmem:[#allocation4 + $0x2] sm:$0x1] %v1197_v6  ;;  %v2349_v57 = vld [vmem:[%s3106_s5 + $0x110] sm:$0xff]  ;;  %v1324_v13 = vld [vmem:[#allocation4 + $0x5] sm:$0x1] }
 0x2bd   : > { %1273 = vst [vmem:[#allocation4 + $0x4] sm:$0x1] %v1272_v7  ;;  %1807 = vmatpush.bf16.msra.mxu3 %v2349_v57 }
 0x2c1   : > { %1808 = vmatpush.bf16.msra.mxu3 %v2348_v25 }
 0x2c2   : > { %v1322_v14 = vpop.permute.xlu2 %1321  ;;  %v1151_v15 = vpop.permute.xlu1 %1150  ;;  %v761_v16 = vld [vmem:[#allocation3 + $0x48] sm:$0xff] }
 0x2c3   : > { %v1325_v0 = vsel %vm2926_vm0, %v1322_v14, %v1324_v13  ;;  %v1154_v19 = vsel %vm2926_vm0, %v1151_v15, %v1153_v39  ;;  %v835_v20 = vunpack.c.l.b16 %v761_v16  ;;  %v836_v21 = vunpack.c.h.b16 %v761_v16 }
 0x2c4   : > { %1326 = vst [vmem:[#allocation4 + $0x5] sm:$0x1] %v1325_v0  ;;  %v1281_v30 = vld [vmem:[#allocation4 + $0x4] sm:$0x1] }
 0x2c5   : > { %1155 = vst [vmem:[#allocation4 + $0x1] sm:$0x1] %v1154_v19  ;;  %v847_v23 = vpack.c.b16 %v835_v20, %v835_v20  ;;  %v848_v24 = vpack.c.b16 %v836_v21, %v836_v21  ;;  %1809 = vmatpush.bf16.msra.mxu3 %v2347_v28 }
 0x2c7   : > { %1000 = vmatmul.bf16.gmra.mxu1 %v847_v23  ;;  %1026 = vmatmul.bf16.gmra.mxu2 %v848_v24 }
 0x2ca   : > { %v1279_v31 = vpop.permute.xlu1 %1278 }
 0x2cb   : > { %v1282_v32 = vsel %vm2926_vm0, %v1279_v31, %v1281_v30 }
 0x2cc   : > { %1283 = vst [vmem:[#allocation4 + $0x4] sm:$0x1] %v1282_v32 }
 0x2cd   : > { %v1053_v18 = vpop.f32.mrf.mxu3 }
 0x2d3   : > { %v1331_v33 = vld [vmem:[#allocation4] sm:$0x7f] }
 0x2d4   : > { %1434 = vst [vmem:[#allocation1] ss:$9 sm:$0xff] %v1331_v33 }
 0x2d5   : > { %v1054_v40 = vpop.f32.mrf.mxu3 }
 0x2db   : > { %v1435_v22 = vld [vmem:[#allocation1] sm:$0xff]  ;;  %v1436_v34 = vld [vmem:[#allocation1 + $0x9] sm:$0xff]  ;;  %v1437_v9 = vld [vmem:[#allocation1 + $0x12] sm:$0xff] }
 0x2dc   : > { %1758 = vmatmul.bf16.vlgmr.msrb.gmra.mxu3 %v1435_v22  ;;  %1771 = vmatmul.bf16.vlgmr.msrb.gmra.mxu0 %v1436_v34  ;;  %v1438_v37 = vld [vmem:[#allocation1 + $0x1b] sm:$0xff]  ;;  %v1439_v38 = vld [vmem:[#allocation1 + $0x24] sm:$0xff]  ;;  %v1440_v41 = vld [vmem:[#allocation1 + $0x2d] sm:$0xff] }
 0x2dd   : > { %1784 = vmatmul.bf16.vlgmr.msrb.gmra.mxu1 %v1437_v9  ;;  %1797 = vmatmul.bf16.vlgmr.msrb.gmra.mxu2 %v1438_v37  ;;  %v1441_v26 = vld [vmem:[#allocation1 + $0x36] sm:$0xff] }
 0x2ec   : > { %1810 = vmatmul.bf16.vlgmr.msra.gmra.mxu3 %v1439_v38  ;;  %1823 = vmatmul.bf16.vlgmr.msra.gmra.mxu0 %v1440_v41 }
 0x2ed   : > { %2280 = vmatmul.msk.bf16.vlgmr.msra.gmra.mxu1 %vm378_vm2, %v1441_v26 }
 0x344   : > { %v1001_v42 = vpop.f32.mrf.mxu1 }
 0x34a   : > { %v1027_v43 = vpop.f32.mrf.mxu2 }
 0x34c   : > { %v1002_v44 = vpop.f32.mrf.mxu1 }
 0x352   : > { %v1028_v45 = vpop.f32.mrf.mxu2 }
 0x359   : > { %v1772_v46 = vpop.f32.mrf.mxu0 }
 0x35a   : > { %v1785_v47 = vpop.f32.mrf.mxu1 }
 0x35f   : > { %v1759_v49 = vpop.f32.mrf.mxu3 }
 0x360   : > { %v1798_v50 = vpop.f32.mrf.mxu2  ;;  %v1760_v52 = vadd.f32 %v1759_v49, %v1432_v48 }
 0x361   : > { %v1774_v51 = vpop.f32.mrf.mxu0 }
 0x362   : > { %v1787_v53 = vpop.f32.mrf.mxu1  ;;  %v1773_v54 = vadd.f32 %v1772_v46, %v1760_v52 }
 0x364   : > { %v1786_v58 = vadd.f32 %v1785_v47, %v1773_v54 }
 0x366   : > { %v1799_v36 = vadd.f32 %v1798_v50, %v1786_v58 }
 0x367   : > { %v1761_v55 = vpop.f32.mrf.mxu3 }
 0x368   : > { %v1800_v35 = vpop.f32.mrf.mxu2 }
 0x369   : > { %v1824_v56 = vpop.f32.mrf.mxu0 }
 0x36a   : > { %v1837_v59 = vpop.f32.mrf.mxu1 }
 0x36f   : > { %v1811_v60 = vpop.f32.mrf.mxu3 }
 0x370   : > { %v1812_v61 = vadd.f32 %v1811_v60, %v1799_v36 }
 0x371   : > { %v1826_v62 = vpop.f32.mrf.mxu0 }
 0x372   : > { %v1825_v63 = vadd.f32 %v1824_v56, %v1812_v61  ;;  %v1839_v1 = vpop.f32.mrf.mxu1 }
 0x374   : > { %v1838_v2 = vadd.f32 %v1837_v59, %v1825_v63 }
 0x376   : > { %v1841_v3 = vmul.f32 %v1838_v2, %v1838_v2 }
 0x377   : > { %v1813_v4 = vpop.f32.mrf.mxu3 }
 0x378   : > { %v1842_v5 = vsel %vm1070_vm10, %v1841_v3, 0.0 }
 0x379   : > { %1843 = vadd.xlane.f32.xlu0 %v1842_v5 }
 0x3ec   : > { %v1844_v6 = vpop.xlane.xlu0 %1843 }
 0x3ed   : > { %v1845_v7 = vadd.f32 1e-10, %v1844_v6 }
 0x3ef   : > { %2411 = vrsqrt.f32 %v1845_v7  ;;  %vm1852_vm2 = vweird.f32 %v1845_v7 }
 0x3f5   : > { %v2412_v8 = vpop.eup %2411 }
 0x3f6   : > { %v1847_v10 = vmul.f32 %v2412_v8, %v1845_v7  ;;  %vm1853_vm1 = vweird.f32 %v2412_v8 }
 0x3f7   : > { %vm1854_vm3 = vmor %vm1852_vm2, %vm1853_vm1 }
 0x3f8   : > { %v1848_v11 = vmul.f32 %v2412_v8, %v1847_v10 }
 0x3fa   : > { %v1849_v39 = vmul.f32 0.5, %v1848_v11 }
 0x3fc   : > { %v1850_v57 = vsub.f32 1.5, %v1849_v39 }
 0x3fe   : > { %v1851_v12 = vmul.f32 %v2412_v8, %v1850_v57 }
 0x400   : > { %v1855_v13 = vsel %vm1854_vm3, %v2412_v8, %v1851_v12 }
 0x401   : > { %v1856_v14 = vmul.f32 %v1855_v13, %v1838_v2 }
 0x403   : > { %v1857_v15 = vmul.f32 10.0, %v1856_v14 }
 0x405   : > { %1858 = vst [vmem:[%s270_s8] sm:$0x1] %v1857_v15 }
 0x406   : > { %2440 = shalt.err (!%p2437_p3)
}
 0x407   : > { %2366 = dma.vmem_to_hbm [thread:$0]  (%p2559_p5), %s1871_s9, 16, %s1873_s13, %s1860_s14  }
 0x408 PF: > { %p2372_p4 = scmp.ge.s32.totalorder %s2475_s27, 2  ;;  %s1884_s21 = sand.u32 1, %s2463_s24  }
 0x409   : > { %s1885_s22 = scalar_lea.sflag [#allocation6], %s1884_s21 }
 0x40a   : > { %p2369_p7 = pnand %p2372_p4, %p2563_p6 }
 0x40c   : > { %p2370_p8 = pneg %p2369_p7 }
 0x40e   : > { %2458 = dma.done.wait (%p2370_p8), %s1885_s22, 16  }
 0x40f   : > { %2460 = vsyncadd (%p2370_p8), %s1885_s22, 4294967280  ;;  %p17_p9 = scmp.ge.s32.totalorder %s2546_s30, 4   ;;  %s3119_s24 = smov %s2467_s25 }
 0x410   : > { %s3120_s25 = smov %s2471_s26  ;;  %s3121_s26 = smov %s2557_s10 }
 0x411   : > { %s3122_s27 = smov %s2546_s30  ;;  %19 = sbr.rel (!%p17_p9) target bundleno = 3 (0x3), region = 99 }
 0x416   :  { %1890 = vsyncpa [#allocation6], 1 }
 0x417   :  { %1892 = vsyncpa [#allocation6 + $0x1], 1 }

</bundles_post_ra>
